<compile_context>
chip_gen: v6e
topology: v6e:2x2x1
jax: 0.10.0
libtpu: 0.0.40
codegen_flags: <defaults>
</compile_context>

<pallas_src>
import jax
import jax.numpy as jnp
from jax import lax
from jax.experimental import pallas as pl
from jax.experimental.pallas import tpu as pltpu
import numpy as np


def _round_up(x, m):
    return ((x + m - 1) // m) * m


def _largest_divisor_leq(n, cap):
    for d in range(min(n, cap), 0, -1):
        if n % d == 0:
            return d
    return 1


def lstm_chunk_kernel(x_ref, wih_ref, whh_ref, b_ref, wout_ref, bout_ref,
                      y_ref, xproj_ref, h_ref, c_ref):
    """Grid = (batch_chunks, time_chunks); time is the serial carry axis.

    x_ref:    (TC*BB, E)   bf16 (or f32) embeddings for this (b, t) chunk,
                           rows ordered time-major within the chunk.
    wih_ref:  (E, 4Hp)     bf16, gate order [i, f, o, g], each gate Hp-padded.
    whh_ref:  (Hp, 4Hp)    bf16, same layout.
    b_ref:    (1, 4Hp)     f32 combined bias (b_ih + b_hh).
    wout_ref: (Hp, Lp)     f32 hidden2label weight.
    bout_ref: (1, Lp)      f32 hidden2label bias.
    y_ref:    (BB, Lp)     f32 output block (written only at the last t-chunk).
    xproj_ref:(TC*BB, 4Hp) f32 scratch: per-chunk hoisted x @ W_ih + b.
    h_ref,c_ref:(BB, Hp)   f32 persistent carry across time-chunks.
    """
    t_chunk = pl.program_id(1)
    nt = pl.num_programs(1)
    BB, Hp = h_ref.shape
    TC = x_ref.shape[0] // BB

    # (1) Hoisted per-chunk input projection (+ bias) as one MXU matmul.
    xproj_ref[...] = (
        jnp.dot(x_ref[...].astype(jnp.bfloat16), wih_ref[...],
                preferred_element_type=jnp.float32)
        + b_ref[...])

    # (2) init_hidden(): zero h0/c0 at the first time-chunk of each batch block.
    @pl.when(t_chunk == 0)
    def _():
        h_ref[...] = jnp.zeros_like(h_ref)
        c_ref[...] = jnp.zeros_like(c_ref)

    # (3) Serial recurrence over this chunk's timesteps; h/c carried in vregs.
    def step(tt, carry):
        h, c = carry
        start = pl.multiple_of(tt * BB, BB)
        xb = xproj_ref[pl.ds(start, BB), :]                      # (BB, 4Hp)
        gates = xb + jnp.dot(h.astype(jnp.bfloat16), whh_ref[...],
                             preferred_element_type=jnp.float32)  # (BB, 4Hp)
        # Gate order [i, f, o, g]: one wide sigmoid launch, one tanh launch.
        sig = jax.nn.sigmoid(gates[:, :3 * Hp])                  # (BB, 3Hp)
        g_g = jnp.tanh(gates[:, 3 * Hp:])                        # (BB, Hp)
        i_g = sig[:, 0 * Hp:1 * Hp]
        f_g = sig[:, 1 * Hp:2 * Hp]
        o_g = sig[:, 2 * Hp:3 * Hp]
        c_new = f_g * c + i_g * g_g
        h_new = o_g * jnp.tanh(c_new)
        return h_new, c_new

    h_last, c_last = lax.fori_loop(0, TC, step, (h_ref[...], c_ref[...]),
                                   unroll=min(TC, 8))
    h_ref[...] = h_last
    c_ref[...] = c_last

    # (4) hidden2label(lstm_out[-1]) only after the last time-chunk.
    @pl.when(t_chunk == nt - 1)
    def _():
        y_ref[...] = (jnp.dot(h_last, wout_ref[...],
                              preferred_element_type=jnp.float32)
                      + bout_ref[...]).astype(y_ref.dtype)


def lstm_classifier_forward(sentence, params, *, time_chunk=32, batch_chunk=64):
    """sentence: (T, B) int32 token ids. Returns logits (B, L)."""
    emb = params["embedding"]            # (V, E)
    w_ih_t = params["w_ih_t"]            # (E, 4H)   gate order [i, f, g, o]
    w_hh_t = params["w_hh_t"]            # (H, 4H)
    b = params["b"]                      # (1, 4H)   (= b_ih + b_hh)
    w_out_t = params["w_out_t"]          # (H, L)
    b_out = params["b_out"]              # (1, L)

    T, B = sentence.shape
    E = emb.shape[1]
    H = w_hh_t.shape[0]
    L = w_out_t.shape[1]

    # Hardware-friendly padded sizes (all zero-padding is exact-zero-safe).
    Hp = _round_up(H, 128)   # each gate -> whole 128-lane tile(s)
    Lp = _round_up(L, 128)   # lane-dense output store
    Bp = _round_up(B, 8)     # full f32 sublane tile

    # Chunking: TC divides T (no fake timesteps), BB is an 8-multiple divisor
    # of Bp so every block second-minor dim is sublane aligned.
    TC = _largest_divisor_leq(T, max(1, time_chunk))
    BB = 8 * _largest_divisor_leq(Bp // 8, max(1, batch_chunk // 8))
    nb, nt = Bp // BB, T // TC
    # bf16 sublane tile is 16; fall back to f32 x if the chunk rows don't pack.
    x_dtype = jnp.bfloat16 if (TC * BB) % 16 == 0 else jnp.float32

    # Embedding lookup (gather) stays in plain JAX glue.
    embeds = jnp.take(emb, sentence, axis=0)                       # (T, B, E)
    embeds = jnp.pad(embeds, ((0, 0), (0, Bp - B), (0, 0)))        # (T, Bp, E)
    # Lay x out batch-chunk-major, time-major inside the chunk:
    # x[b, t*BB + bb, :] = embeds[t, b*BB + bb, :]
    x = (embeds.reshape(T, nb, BB, E)
               .transpose(1, 0, 2, 3)
               .reshape(nb, T * BB, E)
               .astype(x_dtype))

    # Re-lay weights: gate order [i, f, o, g], each gate padded to Hp lanes.
    def prep_gates(w):                                             # (..., 4H) -> (..., 4Hp)
        i_, f_, g_, o_ = jnp.split(w, 4, axis=-1)
        pads = [(0, 0)] * (w.ndim - 1) + [(0, Hp - H)]
        return jnp.concatenate([jnp.pad(p, pads) for p in (i_, f_, o_, g_)],
                               axis=-1)

    wih_p = prep_gates(w_ih_t).astype(jnp.bfloat16)                        # (E, 4Hp)
    whh_p = prep_gates(jnp.pad(w_hh_t, ((0, Hp - H), (0, 0)))
                       ).astype(jnp.bfloat16)                              # (Hp, 4Hp)
    b_p = prep_gates(b).astype(jnp.float32)                                # (1, 4Hp)
    wout_p = jnp.pad(w_out_t, ((0, Hp - H), (0, Lp - L))).astype(jnp.float32)  # (Hp, Lp)
    bout_p = jnp.pad(b_out, ((0, 0), (0, Lp - L))).astype(jnp.float32)         # (1, Lp)

    # Explicit scoped-VMEM budget (defaults: 16 MiB v5e / 32 MiB v6e+v7x).
    def nbytes(shape, dt):
        return int(np.prod(shape)) * jnp.dtype(dt).itemsize
    est = 2 * (nbytes((TC * BB, E), x_dtype)            # double-buffered input
               + nbytes((E, 4 * Hp), jnp.bfloat16)
               + nbytes((Hp, 4 * Hp), jnp.bfloat16)
               + nbytes((1, 4 * Hp), jnp.float32)
               + nbytes((Hp, Lp), jnp.float32)
               + nbytes((1, Lp), jnp.float32)
               + nbytes((BB, Lp), jnp.float32))
    est += nbytes((TC * BB, 4 * Hp), jnp.float32) + 2 * nbytes((BB, Hp), jnp.float32)
    vmem_limit = int(min(max(2 * est, 32 * 1024 * 1024), 64 * 1024 * 1024))

    # Advisory cost so XLA schedules around the custom call.
    flops = (2 * T * Bp * E * 4 * Hp           # x @ W_ih
             + 2 * T * Bp * Hp * 4 * Hp        # h @ W_hh
             + 2 * Bp * Hp * Lp)               # h_T @ W_out
    transcendentals = 5 * T * Bp * Hp
    bytes_accessed = (x.size * x.dtype.itemsize
                      + wih_p.size * 2 + whh_p.size * 2
                      + 4 * (b_p.size + wout_p.size + bout_p.size + Bp * Lp))

    y_pad = pl.pallas_call(
        lstm_chunk_kernel,
        out_shape=jax.ShapeDtypeStruct((Bp, Lp), jnp.float32),
        grid=(nb, nt),
        in_specs=[
            pl.BlockSpec((None, TC * BB, E), lambda b, t: (b, t, 0)),   # x chunk
            pl.BlockSpec((E, 4 * Hp), lambda b, t: (0, 0)),             # W_ih
            pl.BlockSpec((Hp, 4 * Hp), lambda b, t: (0, 0)),            # W_hh
            pl.BlockSpec((1, 4 * Hp), lambda b, t: (0, 0)),             # bias
            pl.BlockSpec((Hp, Lp), lambda b, t: (0, 0)),                # W_out
            pl.BlockSpec((1, Lp), lambda b, t: (0, 0)),                 # b_out
        ],
        out_specs=pl.BlockSpec((BB, Lp), lambda b, t: (b, 0)),
        scratch_shapes=[
            pltpu.VMEM((TC * BB, 4 * Hp), jnp.float32),   # per-chunk x-projection
            pltpu.VMEM((BB, Hp), jnp.float32),            # h carry
            pltpu.VMEM((BB, Hp), jnp.float32),            # c carry
        ],
        compiler_params=pltpu.CompilerParams(
            dimension_semantics=("parallel", "arbitrary"),
            vmem_limit_bytes=vmem_limit),
        cost_estimate=pl.CostEstimate(flops=flops,
                                      transcendentals=transcendentals,
                                      bytes_accessed=bytes_accessed),
    )(x, wih_p, whh_p, b_p, wout_p, bout_p)

    return y_pad[:B, :L]


def make_params(key, vocab_size, embedding_dim, hidden_dim, label_size):
    """Deterministic synthetic init mirroring the PyTorch module's shapes."""
    k = jax.random.split(key, 7)
    V, E, H, L = vocab_size, embedding_dim, hidden_dim, label_size
    s = 1.0 / np.sqrt(H)
    embedding = jax.random.normal(k[0], (V, E), jnp.float32)          # nn.Embedding
    w_ih = jax.random.uniform(k[1], (4 * H, E), jnp.float32, -s, s)   # weight_ih_l0
    w_hh = jax.random.uniform(k[2], (4 * H, H), jnp.float32, -s, s)   # weight_hh_l0
    b_ih = jax.random.uniform(k[3], (4 * H,), jnp.float32, -s, s)
    b_hh = jax.random.uniform(k[4], (4 * H,), jnp.float32, -s, s)
    w_out = jax.random.uniform(k[5], (L, H), jnp.float32, -s, s)      # hidden2label
    b_out = jax.random.uniform(k[6], (L,), jnp.float32, -s, s)
    return {
        "embedding": embedding,
        "w_ih_t": w_ih.T,                          # (E, 4H)
        "w_hh_t": w_hh.T,                          # (H, 4H)
        "b": (b_ih + b_hh).reshape(1, 4 * H),      # (1, 4H)
        "w_out_t": w_out.T,                        # (H, L)
        "b_out": b_out.reshape(1, L),              # (1, L)
    }


def reference_forward(sentence, params):
    """Pure-JAX f32 reference (same PyTorch LSTM semantics)."""
    emb = params["embedding"]
    embeds = jnp.take(emb, sentence, axis=0)       # (T, B, E)
    T, B, _ = embeds.shape
    H = params["w_hh_t"].shape[0]
    h = jnp.zeros((B, H), jnp.float32)
    c = jnp.zeros((B, H), jnp.float32)
    for t in range(T):
        gates = embeds[t] @ params["w_ih_t"] + h @ params["w_hh_t"] + params["b"]
        i = jax.nn.sigmoid(gates[:, 0 * H:1 * H])
        f = jax.nn.sigmoid(gates[:, 1 * H:2 * H])
        g = jnp.tanh(gates[:, 2 * H:3 * H])
        o = jax.nn.sigmoid(gates[:, 3 * H:4 * H])
        c = f * c + i * g
        h = o * jnp.tanh(c)
    return h @ params["w_out_t"] + params["b_out"]


if __name__ == "__main__":
    # Small deterministic config: embedding_dim=16, hidden_dim=32, vocab=50,
    # label_size=4, batch_size=2, seq_len=8.
    T, B, E, H, V, L = 8, 2, 16, 32, 50, 4

    key = jax.random.PRNGKey(0)
    k_param, k_tok = jax.random.split(key)
    params = make_params(k_param, V, E, H, L)
    sentence = jax.random.randint(k_tok, (T, B), 0, V, dtype=jnp.int32)

    y = lstm_classifier_forward(sentence, params)
    y = jax.block_until_ready(y)

    y_ref = reference_forward(sentence, params)
    # Tolerance is looser than before because the MXU inputs (x, W_ih, W_hh)
    # are bf16 per the perf review; accumulation and state stay f32.
    np.testing.assert_allclose(np.asarray(y), np.asarray(y_ref),
                               rtol=5e-2, atol=5e-2)
    print("KERNEL_OK")
</pallas_src>

<mosaic_0001>
module attributes {stable_mosaic.version = 11 : i64} {
  func.func @lstm_chunk_kernel(%arg0: i32, %arg1: i32, %arg2: memref<1x64x16xbf16, #tpu.memory_space<vmem>>, %arg3: memref<16x512xbf16, #tpu.memory_space<vmem>>, %arg4: memref<128x512xbf16, #tpu.memory_space<vmem>>, %arg5: memref<1x512xf32, #tpu.memory_space<vmem>>, %arg6: memref<128x128xf32, #tpu.memory_space<vmem>>, %arg7: memref<1x128xf32, #tpu.memory_space<vmem>>, %arg8: memref<8x128xf32, #tpu.memory_space<vmem>>, %arg9: memref<64x512xf32, #tpu.memory_space<vmem>>, %arg10: memref<8x128xf32, #tpu.memory_space<vmem>>, %arg11: memref<8x128xf32, #tpu.memory_space<vmem>>) attributes {dimension_semantics = [#tpu.dimension_semantics<parallel>, #tpu.dimension_semantics<arbitrary>], iteration_bounds = array<i64: 1, 1>, scalar_prefetch = 0 : i64, scratch_operands = 3 : i64, tpu.core_type = #tpu.core_type<tc>, window_params = [{transform_indices = @transform_0, window_bounds = array<i64: 1, 64, 16>}, {pipeline_mode = #tpu.pipeline_mode<synchronous>, transform_indices = @transform_1, window_bounds = array<i64: 16, 512>}, {pipeline_mode = #tpu.pipeline_mode<synchronous>, transform_indices = @transform_2, window_bounds = array<i64: 128, 512>}, {pipeline_mode = #tpu.pipeline_mode<synchronous>, transform_indices = @transform_3, window_bounds = array<i64: 1, 512>}, {pipeline_mode = #tpu.pipeline_mode<synchronous>, transform_indices = @transform_4, window_bounds = array<i64: 128, 128>}, {pipeline_mode = #tpu.pipeline_mode<synchronous>, transform_indices = @transform_5, window_bounds = array<i64: 1, 128>}, {transform_indices = @transform_6, window_bounds = array<i64: 8, 128>}]} {
    %c0 = arith.constant 0 : index
    %c0_0 = arith.constant 0 : index
    %c0_1 = arith.constant 0 : index
    %0 = vector.load %arg2[%c0, %c0_0, %c0_1] : memref<1x64x16xbf16, #tpu.memory_space<vmem>>, vector<1x64x16xbf16>
    %1 = vector.shape_cast %0 : vector<1x64x16xbf16> to vector<64x16xbf16>
    %c0_2 = arith.constant 0 : index
    %c0_3 = arith.constant 0 : index
    %2 = vector.load %arg3[%c0_2, %c0_3] : memref<16x512xbf16, #tpu.memory_space<vmem>>, vector<16x512xbf16>
    %cst = arith.constant dense<0.000000e+00> : vector<64x512xf32>
    %3 = tpu.matmul %1, %2, %cst {dimension_numbers = #tpu.dot_dimension_numbers<[1], [0], [0], [1], [0, 0, 1, 1], [], []>} : vector<64x16xbf16>, vector<16x512xbf16>, vector<64x512xf32> -> vector<64x512xf32>
    %c0_4 = arith.constant 0 : index
    %c0_5 = arith.constant 0 : index
    %4 = vector.load %arg5[%c0_4, %c0_5] : memref<1x512xf32, #tpu.memory_space<vmem>>, vector<1x512xf32>
    %5 = vector.broadcast %4 : vector<1x512xf32> to vector<64x512xf32>
    %6 = arith.addf %3, %5 : vector<64x512xf32>
    %c0_6 = arith.constant 0 : index
    %c0_7 = arith.constant 0 : index
    %7 = vector.load %arg9[%c0_6, %c0_7] : memref<64x512xf32, #tpu.memory_space<vmem>>, vector<64x512xf32>
    tpu.vector_store %arg9[%c0_6, %c0_7], %6 {strides = array<i32>} : memref<64x512xf32, #tpu.memory_space<vmem>>, vector<64x512xf32>,
    %c0_i32 = arith.constant 0 : i32
    %8 = arith.cmpi eq, %arg1, %c0_i32 : i32
    %9 = arith.extui %8 : i1 to i32
    %c0_i32_8 = arith.constant 0 : i32
    %10 = arith.cmpi ne, %9, %c0_i32_8 : i32
    scf.if %10 {
      %cst_68 = arith.constant 0.000000e+00 : f32
      %210 = vector.broadcast %cst_68 : f32 to vector<8x128xf32>
      %c0_69 = arith.constant 0 : index
      %c0_70 = arith.constant 0 : index
      %211 = vector.load %arg10[%c0_69, %c0_70] : memref<8x128xf32, #tpu.memory_space<vmem>>, vector<8x128xf32>
      tpu.vector_store %arg10[%c0_69, %c0_70], %210 {strides = array<i32>} : memref<8x128xf32, #tpu.memory_space<vmem>>, vector<8x128xf32>,
      %cst_71 = arith.constant 0.000000e+00 : f32
      %212 = vector.broadcast %cst_71 : f32 to vector<8x128xf32>
      %c0_72 = arith.constant 0 : index
      %c0_73 = arith.constant 0 : index
      %213 = vector.load %arg11[%c0_72, %c0_73] : memref<8x128xf32, #tpu.memory_space<vmem>>, vector<8x128xf32>
      tpu.vector_store %arg11[%c0_72, %c0_73], %212 {strides = array<i32>} : memref<8x128xf32, #tpu.memory_space<vmem>>, vector<8x128xf32>,
    } else {
    }
    %c0_9 = arith.constant 0 : index
    %c0_10 = arith.constant 0 : index
    %11 = vector.load %arg10[%c0_9, %c0_10] : memref<8x128xf32, #tpu.memory_space<vmem>>, vector<8x128xf32>
    %c0_11 = arith.constant 0 : index
    %c0_12 = arith.constant 0 : index
    %12 = vector.load %arg11[%c0_11, %c0_12] : memref<8x128xf32, #tpu.memory_space<vmem>>, vector<8x128xf32>
    %c0_i32_13 = arith.constant 0 : i32
    %c8_i32 = arith.constant 8 : i32
    %13 = arith.muli %c0_i32_13, %c8_i32 : i32
    %14 = tpu.assume_multiple %13, 8 : i32
    %15 = arith.index_cast %14 : i32 to index
    %c0_14 = arith.constant 0 : index
    %16 = vector.load %arg9[%15, %c0_14] : memref<64x512xf32, #tpu.memory_space<vmem>>, vector<8x512xf32>
    %17 = arith.truncf %11 : vector<8x128xf32> to vector<8x128xbf16>
    %c0_15 = arith.constant 0 : index
    %c0_16 = arith.constant 0 : index
    %18 = vector.load %arg4[%c0_15, %c0_16] : memref<128x512xbf16, #tpu.memory_space<vmem>>, vector<128x512xbf16>
    %cst_17 = arith.constant dense<0.000000e+00> : vector<8x512xf32>
    %19 = tpu.matmul %17, %18, %cst_17 {dimension_numbers = #tpu.dot_dimension_numbers<[1], [0], [0], [1], [0, 0, 1, 1], [], []>} : vector<8x128xbf16>, vector<128x512xbf16>, vector<8x512xf32> -> vector<8x512xf32>
    %20 = arith.addf %16, %19 : vector<8x512xf32>
    %21 = vector.extract_strided_slice %20 {offsets = [0, 0], sizes = [8, 384], strides = [1, 1]} : vector<8x512xf32> to vector<8x384xf32>
    %22 = arith.negf %21 : vector<8x384xf32>
    %23 = math.exp %22 : vector<8x384xf32>
    %cst_18 = arith.constant 1.000000e+00 : f32
    %24 = vector.broadcast %cst_18 : f32 to vector<8x384xf32>
    %25 = arith.addf %24, %23 : vector<8x384xf32>
    %26 = arith.divf %24, %25 : vector<8x384xf32>
    %27 = vector.extract_strided_slice %20 {offsets = [0, 384], sizes = [8, 128], strides = [1, 1]} : vector<8x512xf32> to vector<8x128xf32>
    %28 = math.tanh %27 : vector<8x128xf32>
    %29 = vector.extract_strided_slice %26 {offsets = [0, 0], sizes = [8, 128], strides = [1, 1]} : vector<8x384xf32> to vector<8x128xf32>
    %30 = vector.extract_strided_slice %26 {offsets = [0, 128], sizes = [8, 128], strides = [1, 1]} : vector<8x384xf32> to vector<8x128xf32>
    %31 = vector.extract_strided_slice %26 {offsets = [0, 256], sizes = [8, 128], strides = [1, 1]} : vector<8x384xf32> to vector<8x128xf32>
    %32 = arith.mulf %30, %12 : vector<8x128xf32>
    %33 = arith.mulf %29, %28 : vector<8x128xf32>
    %34 = arith.addf %32, %33 : vector<8x128xf32>
    %35 = math.tanh %34 : vector<8x128xf32>
    %36 = arith.mulf %31, %35 : vector<8x128xf32>
    %c1_i32 = arith.constant 1 : i32
    %c8_i32_19 = arith.constant 8 : i32
    %37 = arith.muli %c1_i32, %c8_i32_19 : i32
    %38 = tpu.assume_multiple %37, 8 : i32
    %39 = arith.index_cast %38 : i32 to index
    %c0_20 = arith.constant 0 : index
    %40 = vector.load %arg9[%39, %c0_20] : memref<64x512xf32, #tpu.memory_space<vmem>>, vector<8x512xf32>
    %41 = arith.truncf %36 : vector<8x128xf32> to vector<8x128xbf16>
    %c0_21 = arith.constant 0 : index
    %c0_22 = arith.constant 0 : index
    %42 = vector.load %arg4[%c0_21, %c0_22] : memref<128x512xbf16, #tpu.memory_space<vmem>>, vector<128x512xbf16>
    %cst_23 = arith.constant dense<0.000000e+00> : vector<8x512xf32>
    %43 = tpu.matmul %41, %42, %cst_23 {dimension_numbers = #tpu.dot_dimension_numbers<[1], [0], [0], [1], [0, 0, 1, 1], [], []>} : vector<8x128xbf16>, vector<128x512xbf16>, vector<8x512xf32> -> vector<8x512xf32>
    %44 = arith.addf %40, %43 : vector<8x512xf32>
    %45 = vector.extract_strided_slice %44 {offsets = [0, 0], sizes = [8, 384], strides = [1, 1]} : vector<8x512xf32> to vector<8x384xf32>
    %46 = arith.negf %45 : vector<8x384xf32>
    %47 = math.exp %46 : vector<8x384xf32>
    %cst_24 = arith.constant 1.000000e+00 : f32
    %48 = vector.broadcast %cst_24 : f32 to vector<8x384xf32>
    %49 = arith.addf %48, %47 : vector<8x384xf32>
    %50 = arith.divf %48, %49 : vector<8x384xf32>
    %51 = vector.extract_strided_slice %44 {offsets = [0, 384], sizes = [8, 128], strides = [1, 1]} : vector<8x512xf32> to vector<8x128xf32>
    %52 = math.tanh %51 : vector<8x128xf32>
    %53 = vector.extract_strided_slice %50 {offsets = [0, 0], sizes = [8, 128], strides = [1, 1]} : vector<8x384xf32> to vector<8x128xf32>
    %54 = vector.extract_strided_slice %50 {offsets = [0, 128], sizes = [8, 128], strides = [1, 1]} : vector<8x384xf32> to vector<8x128xf32>
    %55 = vector.extract_strided_slice %50 {offsets = [0, 256], sizes = [8, 128], strides = [1, 1]} : vector<8x384xf32> to vector<8x128xf32>
    %56 = arith.mulf %54, %34 : vector<8x128xf32>
    %57 = arith.mulf %53, %52 : vector<8x128xf32>
    %58 = arith.addf %56, %57 : vector<8x128xf32>
    %59 = math.tanh %58 : vector<8x128xf32>
    %60 = arith.mulf %55, %59 : vector<8x128xf32>
    %c2_i32 = arith.constant 2 : i32
    %c8_i32_25 = arith.constant 8 : i32
    %61 = arith.muli %c2_i32, %c8_i32_25 : i32
    %62 = tpu.assume_multiple %61, 8 : i32
    %63 = arith.index_cast %62 : i32 to index
    %c0_26 = arith.constant 0 : index
    %64 = vector.load %arg9[%63, %c0_26] : memref<64x512xf32, #tpu.memory_space<vmem>>, vector<8x512xf32>
    %65 = arith.truncf %60 : vector<8x128xf32> to vector<8x128xbf16>
    %c0_27 = arith.constant 0 : index
    %c0_28 = arith.constant 0 : index
    %66 = vector.load %arg4[%c0_27, %c0_28] : memref<128x512xbf16, #tpu.memory_space<vmem>>, vector<128x512xbf16>
    %cst_29 = arith.constant dense<0.000000e+00> : vector<8x512xf32>
    %67 = tpu.matmul %65, %66, %cst_29 {dimension_numbers = #tpu.dot_dimension_numbers<[1], [0], [0], [1], [0, 0, 1, 1], [], []>} : vector<8x128xbf16>, vector<128x512xbf16>, vector<8x512xf32> -> vector<8x512xf32>
    %68 = arith.addf %64, %67 : vector<8x512xf32>
    %69 = vector.extract_strided_slice %68 {offsets = [0, 0], sizes = [8, 384], strides = [1, 1]} : vector<8x512xf32> to vector<8x384xf32>
    %70 = arith.negf %69 : vector<8x384xf32>
    %71 = math.exp %70 : vector<8x384xf32>
    %cst_30 = arith.constant 1.000000e+00 : f32
    %72 = vector.broadcast %cst_30 : f32 to vector<8x384xf32>
    %73 = arith.addf %72, %71 : vector<8x384xf32>
    %74 = arith.divf %72, %73 : vector<8x384xf32>
    %75 = vector.extract_strided_slice %68 {offsets = [0, 384], sizes = [8, 128], strides = [1, 1]} : vector<8x512xf32> to vector<8x128xf32>
    %76 = math.tanh %75 : vector<8x128xf32>
    %77 = vector.extract_strided_slice %74 {offsets = [0, 0], sizes = [8, 128], strides = [1, 1]} : vector<8x384xf32> to vector<8x128xf32>
    %78 = vector.extract_strided_slice %74 {offsets = [0, 128], sizes = [8, 128], strides = [1, 1]} : vector<8x384xf32> to vector<8x128xf32>
    %79 = vector.extract_strided_slice %74 {offsets = [0, 256], sizes = [8, 128], strides = [1, 1]} : vector<8x384xf32> to vector<8x128xf32>
    %80 = arith.mulf %78, %58 : vector<8x128xf32>
    %81 = arith.mulf %77, %76 : vector<8x128xf32>
    %82 = arith.addf %80, %81 : vector<8x128xf32>
    %83 = math.tanh %82 : vector<8x128xf32>
    %84 = arith.mulf %79, %83 : vector<8x128xf32>
    %c3_i32 = arith.constant 3 : i32
    %c8_i32_31 = arith.constant 8 : i32
    %85 = arith.muli %c3_i32, %c8_i32_31 : i32
    %86 = tpu.assume_multiple %85, 8 : i32
    %87 = arith.index_cast %86 : i32 to index
    %c0_32 = arith.constant 0 : index
    %88 = vector.load %arg9[%87, %c0_32] : memref<64x512xf32, #tpu.memory_space<vmem>>, vector<8x512xf32>
    %89 = arith.truncf %84 : vector<8x128xf32> to vector<8x128xbf16>
    %c0_33 = arith.constant 0 : index
    %c0_34 = arith.constant 0 : index
    %90 = vector.load %arg4[%c0_33, %c0_34] : memref<128x512xbf16, #tpu.memory_space<vmem>>, vector<128x512xbf16>
    %cst_35 = arith.constant dense<0.000000e+00> : vector<8x512xf32>
    %91 = tpu.matmul %89, %90, %cst_35 {dimension_numbers = #tpu.dot_dimension_numbers<[1], [0], [0], [1], [0, 0, 1, 1], [], []>} : vector<8x128xbf16>, vector<128x512xbf16>, vector<8x512xf32> -> vector<8x512xf32>
    %92 = arith.addf %88, %91 : vector<8x512xf32>
    %93 = vector.extract_strided_slice %92 {offsets = [0, 0], sizes = [8, 384], strides = [1, 1]} : vector<8x512xf32> to vector<8x384xf32>
    %94 = arith.negf %93 : vector<8x384xf32>
    %95 = math.exp %94 : vector<8x384xf32>
    %cst_36 = arith.constant 1.000000e+00 : f32
    %96 = vector.broadcast %cst_36 : f32 to vector<8x384xf32>
    %97 = arith.addf %96, %95 : vector<8x384xf32>
    %98 = arith.divf %96, %97 : vector<8x384xf32>
    %99 = vector.extract_strided_slice %92 {offsets = [0, 384], sizes = [8, 128], strides = [1, 1]} : vector<8x512xf32> to vector<8x128xf32>
    %100 = math.tanh %99 : vector<8x128xf32>
    %101 = vector.extract_strided_slice %98 {offsets = [0, 0], sizes = [8, 128], strides = [1, 1]} : vector<8x384xf32> to vector<8x128xf32>
    %102 = vector.extract_strided_slice %98 {offsets = [0, 128], sizes = [8, 128], strides = [1, 1]} : vector<8x384xf32> to vector<8x128xf32>
    %103 = vector.extract_strided_slice %98 {offsets = [0, 256], sizes = [8, 128], strides = [1, 1]} : vector<8x384xf32> to vector<8x128xf32>
    %104 = arith.mulf %102, %82 : vector<8x128xf32>
    %105 = arith.mulf %101, %100 : vector<8x128xf32>
    %106 = arith.addf %104, %105 : vector<8x128xf32>
    %107 = math.tanh %106 : vector<8x128xf32>
    %108 = arith.mulf %103, %107 : vector<8x128xf32>
    %c4_i32 = arith.constant 4 : i32
    %c8_i32_37 = arith.constant 8 : i32
    %109 = arith.muli %c4_i32, %c8_i32_37 : i32
    %110 = tpu.assume_multiple %109, 8 : i32
    %111 = arith.index_cast %110 : i32 to index
    %c0_38 = arith.constant 0 : index
    %112 = vector.load %arg9[%111, %c0_38] : memref<64x512xf32, #tpu.memory_space<vmem>>, vector<8x512xf32>
    %113 = arith.truncf %108 : vector<8x128xf32> to vector<8x128xbf16>
    %c0_39 = arith.constant 0 : index
    %c0_40 = arith.constant 0 : index
    %114 = vector.load %arg4[%c0_39, %c0_40] : memref<128x512xbf16, #tpu.memory_space<vmem>>, vector<128x512xbf16>
    %cst_41 = arith.constant dense<0.000000e+00> : vector<8x512xf32>
    %115 = tpu.matmul %113, %114, %cst_41 {dimension_numbers = #tpu.dot_dimension_numbers<[1], [0], [0], [1], [0, 0, 1, 1], [], []>} : vector<8x128xbf16>, vector<128x512xbf16>, vector<8x512xf32> -> vector<8x512xf32>
    %116 = arith.addf %112, %115 : vector<8x512xf32>
    %117 = vector.extract_strided_slice %116 {offsets = [0, 0], sizes = [8, 384], strides = [1, 1]} : vector<8x512xf32> to vector<8x384xf32>
    %118 = arith.negf %117 : vector<8x384xf32>
    %119 = math.exp %118 : vector<8x384xf32>
    %cst_42 = arith.constant 1.000000e+00 : f32
    %120 = vector.broadcast %cst_42 : f32 to vector<8x384xf32>
    %121 = arith.addf %120, %119 : vector<8x384xf32>
    %122 = arith.divf %120, %121 : vector<8x384xf32>
    %123 = vector.extract_strided_slice %116 {offsets = [0, 384], sizes = [8, 128], strides = [1, 1]} : vector<8x512xf32> to vector<8x128xf32>
    %124 = math.tanh %123 : vector<8x128xf32>
    %125 = vector.extract_strided_slice %122 {offsets = [0, 0], sizes = [8, 128], strides = [1, 1]} : vector<8x384xf32> to vector<8x128xf32>
    %126 = vector.extract_strided_slice %122 {offsets = [0, 128], sizes = [8, 128], strides = [1, 1]} : vector<8x384xf32> to vector<8x128xf32>
    %127 = vector.extract_strided_slice %122 {offsets = [0, 256], sizes = [8, 128], strides = [1, 1]} : vector<8x384xf32> to vector<8x128xf32>
    %128 = arith.mulf %126, %106 : vector<8x128xf32>
    %129 = arith.mulf %125, %124 : vector<8x128xf32>
    %130 = arith.addf %128, %129 : vector<8x128xf32>
    %131 = math.tanh %130 : vector<8x128xf32>
    %132 = arith.mulf %127, %131 : vector<8x128xf32>
    %c5_i32 = arith.constant 5 : i32
    %c8_i32_43 = arith.constant 8 : i32
    %133 = arith.muli %c5_i32, %c8_i32_43 : i32
    %134 = tpu.assume_multiple %133, 8 : i32
    %135 = arith.index_cast %134 : i32 to index
    %c0_44 = arith.constant 0 : index
    %136 = vector.load %arg9[%135, %c0_44] : memref<64x512xf32, #tpu.memory_space<vmem>>, vector<8x512xf32>
    %137 = arith.truncf %132 : vector<8x128xf32> to vector<8x128xbf16>
    %c0_45 = arith.constant 0 : index
    %c0_46 = arith.constant 0 : index
    %138 = vector.load %arg4[%c0_45, %c0_46] : memref<128x512xbf16, #tpu.memory_space<vmem>>, vector<128x512xbf16>
    %cst_47 = arith.constant dense<0.000000e+00> : vector<8x512xf32>
    %139 = tpu.matmul %137, %138, %cst_47 {dimension_numbers = #tpu.dot_dimension_numbers<[1], [0], [0], [1], [0, 0, 1, 1], [], []>} : vector<8x128xbf16>, vector<128x512xbf16>, vector<8x512xf32> -> vector<8x512xf32>
    %140 = arith.addf %136, %139 : vector<8x512xf32>
    %141 = vector.extract_strided_slice %140 {offsets = [0, 0], sizes = [8, 384], strides = [1, 1]} : vector<8x512xf32> to vector<8x384xf32>
    %142 = arith.negf %141 : vector<8x384xf32>
    %143 = math.exp %142 : vector<8x384xf32>
    %cst_48 = arith.constant 1.000000e+00 : f32
    %144 = vector.broadcast %cst_48 : f32 to vector<8x384xf32>
    %145 = arith.addf %144, %143 : vector<8x384xf32>
    %146 = arith.divf %144, %145 : vector<8x384xf32>
    %147 = vector.extract_strided_slice %140 {offsets = [0, 384], sizes = [8, 128], strides = [1, 1]} : vector<8x512xf32> to vector<8x128xf32>
    %148 = math.tanh %147 : vector<8x128xf32>
    %149 = vector.extract_strided_slice %146 {offsets = [0, 0], sizes = [8, 128], strides = [1, 1]} : vector<8x384xf32> to vector<8x128xf32>
    %150 = vector.extract_strided_slice %146 {offsets = [0, 128], sizes = [8, 128], strides = [1, 1]} : vector<8x384xf32> to vector<8x128xf32>
    %151 = vector.extract_strided_slice %146 {offsets = [0, 256], sizes = [8, 128], strides = [1, 1]} : vector<8x384xf32> to vector<8x128xf32>
    %152 = arith.mulf %150, %130 : vector<8x128xf32>
    %153 = arith.mulf %149, %148 : vector<8x128xf32>
    %154 = arith.addf %152, %153 : vector<8x128xf32>
    %155 = math.tanh %154 : vector<8x128xf32>
    %156 = arith.mulf %151, %155 : vector<8x128xf32>
    %c6_i32 = arith.constant 6 : i32
    %c8_i32_49 = arith.constant 8 : i32
    %157 = arith.muli %c6_i32, %c8_i32_49 : i32
    %158 = tpu.assume_multiple %157, 8 : i32
    %159 = arith.index_cast %158 : i32 to index
    %c0_50 = arith.constant 0 : index
    %160 = vector.load %arg9[%159, %c0_50] : memref<64x512xf32, #tpu.memory_space<vmem>>, vector<8x512xf32>
    %161 = arith.truncf %156 : vector<8x128xf32> to vector<8x128xbf16>
    %c0_51 = arith.constant 0 : index
    %c0_52 = arith.constant 0 : index
    %162 = vector.load %arg4[%c0_51, %c0_52] : memref<128x512xbf16, #tpu.memory_space<vmem>>, vector<128x512xbf16>
    %cst_53 = arith.constant dense<0.000000e+00> : vector<8x512xf32>
    %163 = tpu.matmul %161, %162, %cst_53 {dimension_numbers = #tpu.dot_dimension_numbers<[1], [0], [0], [1], [0, 0, 1, 1], [], []>} : vector<8x128xbf16>, vector<128x512xbf16>, vector<8x512xf32> -> vector<8x512xf32>
    %164 = arith.addf %160, %163 : vector<8x512xf32>
    %165 = vector.extract_strided_slice %164 {offsets = [0, 0], sizes = [8, 384], strides = [1, 1]} : vector<8x512xf32> to vector<8x384xf32>
    %166 = arith.negf %165 : vector<8x384xf32>
    %167 = math.exp %166 : vector<8x384xf32>
    %cst_54 = arith.constant 1.000000e+00 : f32
    %168 = vector.broadcast %cst_54 : f32 to vector<8x384xf32>
    %169 = arith.addf %168, %167 : vector<8x384xf32>
    %170 = arith.divf %168, %169 : vector<8x384xf32>
    %171 = vector.extract_strided_slice %164 {offsets = [0, 384], sizes = [8, 128], strides = [1, 1]} : vector<8x512xf32> to vector<8x128xf32>
    %172 = math.tanh %171 : vector<8x128xf32>
    %173 = vector.extract_strided_slice %170 {offsets = [0, 0], sizes = [8, 128], strides = [1, 1]} : vector<8x384xf32> to vector<8x128xf32>
    %174 = vector.extract_strided_slice %170 {offsets = [0, 128], sizes = [8, 128], strides = [1, 1]} : vector<8x384xf32> to vector<8x128xf32>
    %175 = vector.extract_strided_slice %170 {offsets = [0, 256], sizes = [8, 128], strides = [1, 1]} : vector<8x384xf32> to vector<8x128xf32>
    %176 = arith.mulf %174, %154 : vector<8x128xf32>
    %177 = arith.mulf %173, %172 : vector<8x128xf32>
    %178 = arith.addf %176, %177 : vector<8x128xf32>
    %179 = math.tanh %178 : vector<8x128xf32>
    %180 = arith.mulf %175, %179 : vector<8x128xf32>
    %c7_i32 = arith.constant 7 : i32
    %c8_i32_55 = arith.constant 8 : i32
    %181 = arith.muli %c7_i32, %c8_i32_55 : i32
    %182 = tpu.assume_multiple %181, 8 : i32
    %183 = arith.index_cast %182 : i32 to index
    %c0_56 = arith.constant 0 : index
    %184 = vector.load %arg9[%183, %c0_56] : memref<64x512xf32, #tpu.memory_space<vmem>>, vector<8x512xf32>
    %185 = arith.truncf %180 : vector<8x128xf32> to vector<8x128xbf16>
    %c0_57 = arith.constant 0 : index
    %c0_58 = arith.constant 0 : index
    %186 = vector.load %arg4[%c0_57, %c0_58] : memref<128x512xbf16, #tpu.memory_space<vmem>>, vector<128x512xbf16>
    %cst_59 = arith.constant dense<0.000000e+00> : vector<8x512xf32>
    %187 = tpu.matmul %185, %186, %cst_59 {dimension_numbers = #tpu.dot_dimension_numbers<[1], [0], [0], [1], [0, 0, 1, 1], [], []>} : vector<8x128xbf16>, vector<128x512xbf16>, vector<8x512xf32> -> vector<8x512xf32>
    %188 = arith.addf %184, %187 : vector<8x512xf32>
    %189 = vector.extract_strided_slice %188 {offsets = [0, 0], sizes = [8, 384], strides = [1, 1]} : vector<8x512xf32> to vector<8x384xf32>
    %190 = arith.negf %189 : vector<8x384xf32>
    %191 = math.exp %190 : vector<8x384xf32>
    %cst_60 = arith.constant 1.000000e+00 : f32
    %192 = vector.broadcast %cst_60 : f32 to vector<8x384xf32>
    %193 = arith.addf %192, %191 : vector<8x384xf32>
    %194 = arith.divf %192, %193 : vector<8x384xf32>
    %195 = vector.extract_strided_slice %188 {offsets = [0, 384], sizes = [8, 128], strides = [1, 1]} : vector<8x512xf32> to vector<8x128xf32>
    %196 = math.tanh %195 : vector<8x128xf32>
    %197 = vector.extract_strided_slice %194 {offsets = [0, 0], sizes = [8, 128], strides = [1, 1]} : vector<8x384xf32> to vector<8x128xf32>
    %198 = vector.extract_strided_slice %194 {offsets = [0, 128], sizes = [8, 128], strides = [1, 1]} : vector<8x384xf32> to vector<8x128xf32>
    %199 = vector.extract_strided_slice %194 {offsets = [0, 256], sizes = [8, 128], strides = [1, 1]} : vector<8x384xf32> to vector<8x128xf32>
    %200 = arith.mulf %198, %178 : vector<8x128xf32>
    %201 = arith.mulf %197, %196 : vector<8x128xf32>
    %202 = arith.addf %200, %201 : vector<8x128xf32>
    %203 = math.tanh %202 : vector<8x128xf32>
    %204 = arith.mulf %199, %203 : vector<8x128xf32>
    %c8_i32_61 = arith.constant 8 : i32
    %c0_62 = arith.constant 0 : index
    %c0_63 = arith.constant 0 : index
    %205 = vector.load %arg10[%c0_62, %c0_63] : memref<8x128xf32, #tpu.memory_space<vmem>>, vector<8x128xf32>
    tpu.vector_store %arg10[%c0_62, %c0_63], %204 {strides = array<i32>} : memref<8x128xf32, #tpu.memory_space<vmem>>, vector<8x128xf32>,
    %c0_64 = arith.constant 0 : index
    %c0_65 = arith.constant 0 : index
    %206 = vector.load %arg11[%c0_64, %c0_65] : memref<8x128xf32, #tpu.memory_space<vmem>>, vector<8x128xf32>
    tpu.vector_store %arg11[%c0_64, %c0_65], %202 {strides = array<i32>} : memref<8x128xf32, #tpu.memory_space<vmem>>, vector<8x128xf32>,
    %c0_i32_66 = arith.constant 0 : i32
    %207 = arith.cmpi eq, %arg1, %c0_i32_66 : i32
    %208 = arith.extui %207 : i1 to i32
    %c0_i32_67 = arith.constant 0 : i32
    %209 = arith.cmpi ne, %208, %c0_i32_67 : i32
    scf.if %209 {
      %c0_68 = arith.constant 0 : index
      %c0_69 = arith.constant 0 : index
      %210 = vector.load %arg6[%c0_68, %c0_69] : memref<128x128xf32, #tpu.memory_space<vmem>>, vector<128x128xf32>
      %cst_70 = arith.constant dense<0.000000e+00> : vector<8x128xf32>
      %211 = tpu.matmul %204, %210, %cst_70 {dimension_numbers = #tpu.dot_dimension_numbers<[1], [0], [0], [1], [0, 0, 1, 1], [], []>} : vector<8x128xf32>, vector<128x128xf32>, vector<8x128xf32> -> vector<8x128xf32>
      %c0_71 = arith.constant 0 : index
      %c0_72 = arith.constant 0 : index
      %212 = vector.load %arg7[%c0_71, %c0_72] : memref<1x128xf32, #tpu.memory_space<vmem>>, vector<1x128xf32>
      %213 = vector.broadcast %212 : vector<1x128xf32> to vector<8x128xf32>
      %214 = arith.addf %211, %213 : vector<8x128xf32>
      %c0_73 = arith.constant 0 : index
      %c0_74 = arith.constant 0 : index
      %215 = vector.load %arg8[%c0_73, %c0_74] : memref<8x128xf32, #tpu.memory_space<vmem>>, vector<8x128xf32>
      tpu.vector_store %arg8[%c0_73, %c0_74], %214 {strides = array<i32>} : memref<8x128xf32, #tpu.memory_space<vmem>>, vector<8x128xf32>,
    } else {
    }
    return
  }
  func.func @transform_0(%arg0: i32, %arg1: i32) -> (i32, i32, i32) {
    %c0_i32 = arith.constant 0 : i32
    %c0_i32_0 = arith.constant 0 : i32
    return %arg0, %arg1, %c0_i32 : i32, i32, i32
  }
  func.func @transform_1(%arg0: i32, %arg1: i32) -> (i32, i32) {
    %c0_i32 = arith.constant 0 : i32
    %c0_i32_0 = arith.constant 0 : i32
    %c0_i32_1 = arith.constant 0 : i32
    return %c0_i32, %c0_i32_0 : i32, i32
  }
  func.func @transform_2(%arg0: i32, %arg1: i32) -> (i32, i32) {
    %c0_i32 = arith.constant 0 : i32
    %c0_i32_0 = arith.constant 0 : i32
    %c0_i32_1 = arith.constant 0 : i32
    return %c0_i32, %c0_i32_0 : i32, i32
  }
  func.func @transform_3(%arg0: i32, %arg1: i32) -> (i32, i32) {
    %c0_i32 = arith.constant 0 : i32
    %c0_i32_0 = arith.constant 0 : i32
    %c0_i32_1 = arith.constant 0 : i32
    return %c0_i32, %c0_i32_0 : i32, i32
  }
  func.func @transform_4(%arg0: i32, %arg1: i32) -> (i32, i32) {
    %c0_i32 = arith.constant 0 : i32
    %c0_i32_0 = arith.constant 0 : i32
    %c0_i32_1 = arith.constant 0 : i32
    return %c0_i32, %c0_i32_0 : i32, i32
  }
  func.func @transform_5(%arg0: i32, %arg1: i32) -> (i32, i32) {
    %c0_i32 = arith.constant 0 : i32
    %c0_i32_0 = arith.constant 0 : i32
    %c0_i32_1 = arith.constant 0 : i32
    return %c0_i32, %c0_i32_0 : i32, i32
  }
  func.func @transform_6(%arg0: i32, %arg1: i32) -> (i32, i32) {
    %c0_i32 = arith.constant 0 : i32
    %c0_i32_0 = arith.constant 0 : i32
    return %arg0, %c0_i32 : i32, i32
  }
}

</mosaic_0001>

<bundles_post_ra>
// kernel: tpu_custom_call.1
= control target key start
LH: loop header
LB: loop body
LE: loop exit
PB: predicated region body
PF: predicated region fallthrough
CT: control target
= control target key end

     0   :  { %11 = vsyncpa [#allocation6], 0  ;;  %s2625_s0 = inlined_call_operand.vmem [shape: bf16[1,64,16], index: 0, kind: input, shape index: {}]   ;;  %s2626_s1 = inlined_call_operand.vmem [shape: bf16[16,512], index: 1, kind: input, shape index: {}]   ;;  %s2627_s2 = inlined_call_operand.hbm [shape: bf16[128,512], index: 2, kind: input, shape index: {}]   ;;  %s2628_s3 = inlined_call_operand.vmem [shape: f32[1,512], index: 3, kind: input, shape index: {}]   ;;  %s2629_s4 = inlined_call_operand.hbm [shape: f32[128,128], index: 4, kind: input, shape index: {}]   ;;  %s2630_s5 = inlined_call_operand.vmem [shape: f32[1,128], index: 5, kind: input, shape index: {}]   ;;  %s2631_s6 = inlined_call_operand.hbm [shape: f32[8,128], index: 6, kind: output, shape index: {}]  }
   0x1   :  { %12 = vsyncpa [#allocation9], 0 }
   0x2   :  { %13 = vsyncpa [#allocation7], 0  ;;  %s2004_s21 = smov [#allocation5]  }
   0x3   :  { %s23_s22 = sshll.u32 %s2004_s21, 4  ;;  %s24_s22 = int_to_ptr.vmem [resolvable:$true] %s23_s22 }
   0x4   :  { %s1946_s23 = scalar_lea.vmem %s24_s22, 4096  ;;  %p1951_p1 = scmp.lt.s32.totalorder %s24_s22, %s24_s22 }
   0x5   :  { %p1947_p0 = scmp.ne.s32.totalorder %s24_s22, %s1946_s23  ;;  %p1952_p2 = scmp.lt.s32.totalorder %s1946_s23, %s1946_s23 }
   0x7   :  { %p1953_p3 = por %p1952_p2, %p1951_p1 }
   0x9   :  { %p1954_p4 = pnand %p1953_p3, %p1947_p0 }
   0xb   :  { %1957 = shalt.err (!%p1954_p4)
}
   0xc   :  { %s2005_s24 = smov 256   ;;  %s2006_s25 = smov 16  }
   0xd   :  { %29 = dma.hbm_to_vmem [thread:$0]  %s2627_s2, 4096, %s24_s22, [#allocation6], %s2005_s24, %s2005_s24, %s2006_s25  }
   0xe   :  { %s2007_s28 = smov [#allocation8]  }
   0xf   :  { %s37_s29 = sshll.u32 %s2007_s28, 4  ;;  %s38_s29 = int_to_ptr.vmem [resolvable:$true] %s37_s29 }
  0x10   :  { %s1966_s30 = scalar_lea.vmem %s38_s29, 2048  ;;  %p1971_p6 = scmp.lt.s32.totalorder %s38_s29, %s38_s29 }
  0x11   :  { %p1967_p5 = scmp.ne.s32.totalorder %s38_s29, %s1966_s30  ;;  %p1972_p7 = scmp.lt.s32.totalorder %s1966_s30, %s1966_s30 }
  0x13   :  { %p1973_p8 = por %p1972_p7, %p1971_p6 }
  0x15   :  { %p1974_p9 = pnand %p1973_p8, %p1967_p5 }
  0x17   :  { %1977 = shalt.err (!%p1974_p9)
}
  0x18   :  { %s2008_s7 = smov 128   ;;  %s2009_s8 = smov 8  }
  0x19   :  { %43 = dma.hbm_to_vmem [thread:$0]  %s2629_s4, 2048, %s38_s29, [#allocation9], %s2008_s7, %s2008_s7, %s2009_s8  }
  0x1a   :  { %1998 = dma.done.wait [#allocation6], 4096  }
  0x1b   :  { %1999 = vsyncadd [#allocation6], 4294963200 }
  0x1c   :  { %2000 = dma.done.wait [#allocation9], 2048  }
  0x1d   :  { %2001 = vsyncadd [#allocation9], 4294965248  ;;  %v2632_v0 = vmov 0   ;;  %v1720_v1 = vld [vmem:[%s2626_s1 + $0x4] ss:$16 sps:$4 sm:$0xff]   ;;  %vm127_vm0 = vcmask 130048   ;;  %v67_v42 = vlaneseq }
  0x1e   :  { %172 = vmatprep.mubr.bf16.mxu0 %v2632_v0  ;;  %245 = vmatprep.mubr.bf16.mxu1 %v2632_v0  ;;  %v1722_v2 = vld [vmem:[%s2626_s1 + $0xc] ss:$16 sps:$4 sm:$0xff]   ;;  %v1724_v3 = vld [vmem:[%s2626_s1] ss:$16 sps:$4 sm:$0xff]   ;;  %v1725_v4 = vld [vmem:[%s2626_s1 + $0x8] ss:$16 sps:$4 sm:$0xff]  }
  0x1f   :  { %154 = vmatprep.subr.bf16.mxu0 %v1720_v1  ;;  %227 = vmatprep.subr.bf16.mxu1 %v1722_v2  ;;  %v1726_v5 = vld [vmem:[%s2625_s0] sm:$0xff]   ;;  %v2075_v7 = vld [vmem:[#allocation5 + $0xec] ss:$16 sps:$4 sm:$0xff]   ;;  %v2080_v9 = vld [vmem:[#allocation5 + $0xe8] ss:$16 sps:$4 sm:$0xff]   ;;  %v2011_v41 = vmov 0.0|0.0  }
  0x20   :  { %155 = vmatpush1.bf16.msra.mxu0 %v1724_v3  ;;  %228 = vmatpush1.bf16.msra.mxu1 %v1725_v4  ;;  %v2073_v6 = vld [vmem:[#allocation5 + $0xe4] ss:$16 sps:$4 sm:$0xff]   ;;  %v2077_v8 = vld [vmem:[#allocation5 + $0xe0] ss:$16 sps:$4 sm:$0xff]   ;;  %v2088_v11 = vld [vmem:[#allocation5 + $0xcc] ss:$16 sps:$4 sm:$0xff]  }
  0x21   :  { %526 = vmatprep.subr.bf16.mxu0 %v2073_v6  ;;  %v2084_v10 = vld [vmem:[#allocation5 + $0xc4] ss:$16 sps:$4 sm:$0xff]   ;;  %567 = vmatprep.subr.bf16.mxu1 %v2075_v7  ;;  %v2090_v12 = vld [vmem:[#allocation5 + $0xc0] ss:$16 sps:$4 sm:$0xff]   ;;  %v2092_v13 = vld [vmem:[#allocation5 + $0xc8] ss:$16 sps:$4 sm:$0xff]  }
  0x22   :  { %v1739_v14 = vld [vmem:[%s2625_s0 + $0x8] sm:$0xff]   ;;  %v2101_v15 = vld [vmem:[#allocation5 + $0xa4] ss:$16 sps:$4 sm:$0xff]   ;;  %v2107_v17 = vld [vmem:[#allocation5 + $0xa0] ss:$16 sps:$4 sm:$0xff]   ;;  %v68_v43 = vshrl.u32 %v67_v42, 7 }
  0x23   :  { %1592 = vmatmul.mubr.msk.bf16.vlgmr.msra.gmra.mxu0 %vm127_vm0, %v1726_v5  ;;  %1596 = vmatmul.mubr.msk.bf16.vlgmr.msra.gmra.mxu1 %vm127_vm0, %v1726_v5  ;;  %v2104_v16 = vld [vmem:[#allocation5 + $0xac] ss:$16 sps:$4 sm:$0xff]   ;;  %v2109_v18 = vld [vmem:[#allocation5 + $0xa8] ss:$16 sps:$4 sm:$0xff]   ;;  %v2113_v19 = vld [vmem:[#allocation5 + $0x84] ss:$16 sps:$4 sm:$0xff]  }
  0x24   :  { %527 = vmatpush1.bf16.msra.mxu0 %v2077_v8  ;;  %568 = vmatpush1.bf16.msra.mxu1 %v2080_v9  ;;  %v2116_v20 = vld [vmem:[#allocation5 + $0x8c] ss:$16 sps:$4 sm:$0xff]   ;;  %v2120_v21 = vld [vmem:[#allocation5 + $0x80] ss:$16 sps:$4 sm:$0xff]   ;;  %v2123_v22 = vld [vmem:[#allocation5 + $0x88] ss:$16 sps:$4 sm:$0xff]  }
  0x25   :  { %528 = vmatprep.subr.bf16.mxu0 %v2084_v10  ;;  %569 = vmatprep.subr.bf16.mxu1 %v2088_v11  ;;  %v2128_v23 = vld [vmem:[#allocation5 + $0x64] ss:$16 sps:$4 sm:$0xff]   ;;  %v2132_v24 = vld [vmem:[#allocation5 + $0x6c] ss:$16 sps:$4 sm:$0xff]   ;;  %v2138_v26 = vld [vmem:[#allocation5 + $0x60] ss:$16 sps:$4 sm:$0xff]  }
  0x26   :  { %182 = vmatprep.mubr.bf16.mxu0 %v2632_v0  ;;  %255 = vmatprep.mubr.bf16.mxu1 %v2632_v0  ;;  %v1752_v25 = vld [vmem:[%s2625_s0 + $0x10] sm:$0xff]   ;;  %v2142_v27 = vld [vmem:[#allocation5 + $0x68] ss:$16 sps:$4 sm:$0xff]   ;;  %v2147_v29 = vld [vmem:[#allocation5 + $0x4c] ss:$16 sps:$4 sm:$0xff]   ;;  %v77_v44 = vsub.s32 2, %v68_v43 }
  0x27   :  { %v2144_v28 = vld [vmem:[#allocation5 + $0x44] ss:$16 sps:$4 sm:$0xff]   ;;  %v2152_v30 = vld [vmem:[#allocation5 + $0x40] ss:$16 sps:$4 sm:$0xff]   ;;  %v2154_v31 = vld [vmem:[#allocation5 + $0x48] ss:$16 sps:$4 sm:$0xff]  }
  0x28   :  { %529 = vmatpush1.bf16.msra.mxu0 %v2090_v12  ;;  %570 = vmatpush1.bf16.msra.mxu1 %v2092_v13  ;;  %v2159_v32 = vld [vmem:[#allocation5 + $0x24] ss:$16 sps:$4 sm:$0xff]   ;;  %v2163_v33 = vld [vmem:[#allocation5 + $0x2c] ss:$16 sps:$4 sm:$0xff]   ;;  %v2169_v35 = vld [vmem:[#allocation5 + $0x20] ss:$16 sps:$4 sm:$0xff]  }
  0x29   :  { %530 = vmatprep.subr.bf16.mxu0 %v2101_v15  ;;  %571 = vmatprep.subr.bf16.mxu1 %v2104_v16  ;;  %v1765_v34 = vld [vmem:[%s2625_s0 + $0x18] sm:$0xff]   ;;  %v2175_v37 = vld [vmem:[#allocation5 + $0x4] ss:$16 sps:$4 sm:$0xff]   ;;  %v2183_v39 = vld [vmem:[#allocation5] ss:$16 sps:$4 sm:$0xff]   ;;  %v69_v45 = vsub.s32 0, %v68_v43 }
  0x2a   :  { %v2173_v36 = vld [vmem:[#allocation5 + $0x28] ss:$16 sps:$4 sm:$0xff]   ;;  %v2178_v38 = vld [vmem:[#allocation5 + $0xc] ss:$16 sps:$4 sm:$0xff]   ;;  %v81_v46 = vsub.s32 3, %v68_v43  ;;  %v73_v51 = vsub.s32 1, %v68_v43 }
  0x2b   :  { %1593 = vmatmul.mubr.msk.bf16.gmra.mxu0 %vm127_vm0, %v1739_v14  ;;  %1597 = vmatmul.mubr.msk.bf16.gmra.mxu1 %vm127_vm0, %v1739_v14  ;;  %v2188_v40 = vld [vmem:[#allocation5 + $0x8] ss:$16 sps:$4 sm:$0xff]   ;;  %v65_v47 = vld [vmem:[%s2628_s3] sm:$0xf]  ;;  %vm2013_vm1 = vmmov 0   ;;  %s2014_s26 = smov [#allocation10]  }
  0x2c   :  { %531 = vmatpush1.bf16.msra.mxu0 %v2107_v17  ;;  %192 = vmatprep.mubr.bf16.mxu0 %v2632_v0  ;;  %v2237_v50 = vrot.slane %v65_v47, %v77_v44  ;;  %v70_v54 = vrot.slane %v65_v47, %v69_v45  ;;  %v2243_v55 = vrot.slane %v65_v47, %v81_v46  ;;  %s1567_s27 = sshll.u32 %s2014_s26, 4  ;;  %s1568_s27 = int_to_ptr.vmem [resolvable:$true] %s1567_s27 }
  0x2d   :  { %572 = vmatpush1.bf16.msra.mxu1 %v2109_v18  ;;  %532 = vmatprep.subr.bf16.mxu0 %v2113_v19  ;;  %v74_v58 = vrot.slane %v65_v47, %v73_v51  ;;  %s1978_s28 = scalar_lea.vmem %s1568_s27, 128  ;;  %p1983_p11 = scmp.lt.s32.totalorder %s1568_s27, %s1568_s27 }
  0x2e   :  { %573 = vmatprep.subr.bf16.mxu1 %v2116_v20  ;;  %265 = vmatprep.mubr.bf16.mxu1 %v2632_v0  ;;  %p1979_p10 = scmp.ne.s32.totalorder %s1568_s27, %s1978_s28  ;;  %p1984_p12 = scmp.lt.s32.totalorder %s1978_s28, %s1978_s28 }
  0x30   :  { %533 = vmatpush1.bf16.msra.mxu0 %v2120_v21  ;;  %p1985_p13 = por %p1984_p12, %p1983_p11 }
  0x31   :  { %574 = vmatpush1.bf16.msra.mxu1 %v2123_v22  ;;  %534 = vmatprep.subr.bf16.mxu0 %v2128_v23 }
  0x32   :  { %575 = vmatprep.subr.bf16.mxu1 %v2132_v24  ;;  %p1986_p0 = pnand %p1985_p13, %p1979_p10 }
  0x33   :  { %1594 = vmatmul.mubr.msk.bf16.gmra.mxu0 %vm127_vm0, %v1752_v25  ;;  %1598 = vmatmul.mubr.msk.bf16.gmra.mxu1 %vm127_vm0, %v1752_v25 }
  0x34   :  { %535 = vmatpush1.bf16.msra.mxu0 %v2138_v26  ;;  %202 = vmatprep.mubr.bf16.mxu0 %v2632_v0 }
  0x35   :  { %576 = vmatpush1.bf16.msra.mxu1 %v2142_v27  ;;  %536 = vmatprep.subr.bf16.mxu0 %v2144_v28 }
  0x36   :  { %577 = vmatprep.subr.bf16.mxu1 %v2147_v29  ;;  %275 = vmatprep.mubr.bf16.mxu1 %v2632_v0 }
  0x38   :  { %537 = vmatpush1.bf16.msra.mxu0 %v2152_v30 }
  0x39   :  { %578 = vmatpush1.bf16.msra.mxu1 %v2154_v31  ;;  %538 = vmatprep.subr.bf16.mxu0 %v2159_v32 }
  0x3a   :  { %579 = vmatprep.subr.bf16.mxu1 %v2163_v33 }
  0x3b   :  { %1595 = vmatmul.mubr.msk.bf16.gmra.mxu0 %vm127_vm0, %v1765_v34  ;;  %1599 = vmatmul.mubr.msk.bf16.gmra.mxu1 %vm127_vm0, %v1765_v34 }
  0x3c   :  { %539 = vmatpush1.bf16.msra.mxu0 %v2169_v35  ;;  %558 = vmatprep.mubr.bf16.mxu0 %v2632_v0 }
  0x3d   :  { %580 = vmatpush1.bf16.msra.mxu1 %v2173_v36  ;;  %540 = vmatprep.subr.bf16.mxu0 %v2175_v37 }
  0x3e   :  { %581 = vmatprep.subr.bf16.mxu1 %v2178_v38  ;;  %599 = vmatprep.mubr.bf16.mxu1 %v2632_v0 }
  0x40   :  { %541 = vmatpush1.bf16.msra.mxu0 %v2183_v39 }
  0x41   :  { %582 = vmatpush1.bf16.msra.mxu1 %v2188_v40  ;;  %644 = vmatprep.subr.bf16.mxu0 %v2073_v6 }
  0x42   :  { %685 = vmatprep.subr.bf16.mxu1 %v2075_v7 }
  0x43   :  { %559 = vmatmul.mubr.bf16.vlgmr.msra.gmra.mxu0 %v2011_v41 }
  0x44   :  { %600 = vmatmul.mubr.bf16.vlgmr.msra.gmra.mxu1 %v2011_v41  ;;  %645 = vmatpush1.bf16.msra.mxu0 %v2077_v8 }
  0x45   :  { %686 = vmatpush1.bf16.msra.mxu1 %v2080_v9  ;;  %646 = vmatprep.subr.bf16.mxu0 %v2084_v10 }
  0x46   :  { %687 = vmatprep.subr.bf16.mxu1 %v2088_v11  ;;  %676 = vmatprep.mubr.bf16.mxu0 %v2632_v0 }
  0x47   :  { %717 = vmatprep.mubr.bf16.mxu1 %v2632_v0 }
  0x48   :  { %647 = vmatpush1.bf16.msra.mxu0 %v2090_v12 }
  0x49   :  { %688 = vmatpush1.bf16.msra.mxu1 %v2092_v13  ;;  %648 = vmatprep.subr.bf16.mxu0 %v2101_v15 }
  0x4a   :  { %689 = vmatprep.subr.bf16.mxu1 %v2104_v16 }
  0x4c   :  { %649 = vmatpush1.bf16.msra.mxu0 %v2107_v17 }
  0x4d   :  { %690 = vmatpush1.bf16.msra.mxu1 %v2109_v18  ;;  %650 = vmatprep.subr.bf16.mxu0 %v2113_v19 }
  0x4e   :  { %691 = vmatprep.subr.bf16.mxu1 %v2116_v20 }
  0x50   :  { %651 = vmatpush1.bf16.msra.mxu0 %v2120_v21 }
  0x51   :  { %692 = vmatpush1.bf16.msra.mxu1 %v2123_v22  ;;  %652 = vmatprep.subr.bf16.mxu0 %v2128_v23 }
  0x52   :  { %693 = vmatprep.subr.bf16.mxu1 %v2132_v24 }
  0x54   :  { %653 = vmatpush1.bf16.msra.mxu0 %v2138_v26 }
  0x55   :  { %694 = vmatpush1.bf16.msra.mxu1 %v2142_v27  ;;  %654 = vmatprep.subr.bf16.mxu0 %v2144_v28 }
  0x56   :  { %695 = vmatprep.subr.bf16.mxu1 %v2147_v29 }
  0x58   :  { %655 = vmatpush1.bf16.msra.mxu0 %v2152_v30 }
  0x59   :  { %696 = vmatpush1.bf16.msra.mxu1 %v2154_v31  ;;  %656 = vmatprep.subr.bf16.mxu0 %v2159_v32 }
  0x5a   :  { %697 = vmatprep.subr.bf16.mxu1 %v2163_v33 }
  0x5c   :  { %657 = vmatpush1.bf16.msra.mxu0 %v2169_v35 }
  0x5d   :  { %698 = vmatpush1.bf16.msra.mxu1 %v2173_v36  ;;  %658 = vmatprep.subr.bf16.mxu0 %v2175_v37 }
  0x5e   :  { %699 = vmatprep.subr.bf16.mxu1 %v2178_v38 }
  0x60   :  { %659 = vmatpush1.bf16.msra.mxu0 %v2183_v39 }
  0x61   :  { %700 = vmatpush1.bf16.msra.mxu1 %v2188_v40  ;;  %762 = vmatprep.subr.bf16.mxu0 %v2073_v6 }
  0x62   :  { %803 = vmatprep.subr.bf16.mxu1 %v2075_v7 }
  0xe3   :  { %v2233_v48 = vpop.f32.mrf.mxu0  ;;  %v2235_v49 = vpop.f32.mrf.mxu1 }
  0xe5   :  { %v2239_v52 = vpop.f32.mrf.mxu0  ;;  %v2241_v53 = vpop.f32.mrf.mxu1 }
  0xe7   :  { %v178_v56 = vpop.f32.mrf.mxu0  ;;  %v251_v57 = vpop.f32.mrf.mxu1 }
  0xe8   :  { %v2245_v59 = vadd.f32 %v178_v56, %v70_v54  ;;  %v2248_v60 = vadd.f32 %v251_v57, %v2237_v50 }
  0xe9   :  { %v180_v61 = vpop.f32.mrf.mxu0  ;;  %v253_v62 = vpop.f32.mrf.mxu1 }
  0xea   :  { %v2250_v63 = vadd.f32 %v180_v61, %v74_v58  ;;  %v2253_v1 = vadd.f32 %v253_v62, %v2243_v55 }
  0xeb   :  { %v184_v2 = vpop.f32.mrf.mxu0  ;;  %v257_v3 = vpop.f32.mrf.mxu1 }
  0xec   :  { %v2255_v4 = vadd.f32 %v184_v2, %v70_v54  ;;  %v2258_v5 = vadd.f32 %v257_v3, %v2237_v50 }
  0xed   :  { %v186_v14 = vpop.f32.mrf.mxu0  ;;  %v259_v25 = vpop.f32.mrf.mxu1 }
  0xee   :  { %v2260_v34 = vadd.f32 %v186_v14, %v74_v58  ;;  %v2263_v41 = vadd.f32 %v259_v25, %v2243_v55 }
  0xef   :  { %v188_v42 = vpop.f32.mrf.mxu0  ;;  %v261_v43 = vpop.f32.mrf.mxu1 }
  0xf0   :  { %2634 = vst [vmem:[#allocation14_spill] sm:$0xff] %v2263_v41  ;;  %v2265_v44 = vadd.f32 %v188_v42, %v70_v54  ;;  %v2268_v45 = vadd.f32 %v261_v43, %v2237_v50 }
  0xf1   :  { %v190_v46 = vpop.f32.mrf.mxu0  ;;  %v263_v47 = vpop.f32.mrf.mxu1 }
  0xf2   :  { %2635 = vst [vmem:[#allocation15_spill] sm:$0xff] %v2265_v44  ;;  %2636 = vst [vmem:[#allocation16_spill] sm:$0xff] %v2268_v45  ;;  %v2270_v51 = vadd.f32 %v190_v46, %v74_v58  ;;  %v2273_v56 = vadd.f32 %v263_v47, %v2243_v55 }
  0xf3   :  { %v194_v57 = vpop.f32.mrf.mxu0  ;;  %v267_v61 = vpop.f32.mrf.mxu1 }
  0xf4   :  { %2637 = vst [vmem:[#allocation17_spill] sm:$0xff] %v2270_v51  ;;  %2638 = vst [vmem:[#allocation18_spill] sm:$0xff] %v2273_v56  ;;  %v2275_v62 = vadd.f32 %v194_v57, %v70_v54  ;;  %v2278_v2 = vadd.f32 %v267_v61, %v2237_v50 }
  0xf5   :  { %v196_v3 = vpop.f32.mrf.mxu0  ;;  %v269_v14 = vpop.f32.mrf.mxu1 }
  0xf6   :  { %2639 = vst [vmem:[#allocation19_spill] sm:$0xff] %v2275_v62  ;;  %2640 = vst [vmem:[#allocation20_spill] sm:$0xff] %v2278_v2  ;;  %v2280_v25 = vadd.f32 %v196_v3, %v74_v58  ;;  %v2283_v42 = vadd.f32 %v269_v14, %v2243_v55 }
  0xf7   :  { %v198_v43 = vpop.f32.mrf.mxu0  ;;  %v271_v46 = vpop.f32.mrf.mxu1 }
  0xf8   :  { %2641 = vst [vmem:[#allocation21_spill] sm:$0xff] %v2280_v25  ;;  %2642 = vst [vmem:[#allocation22_spill] sm:$0xff] %v2283_v42  ;;  %v2285_v0 = vadd.f32 %v198_v43, %v70_v54  ;;  %v2288_v47 = vadd.f32 %v271_v46, %v2237_v50 }
  0xf9   :  { %v200_v56 = vpop.f32.mrf.mxu0  ;;  %v273_v57 = vpop.f32.mrf.mxu1 }
  0xfa   :  { %2643 = vst [vmem:[#allocation23_spill] sm:$0xff] %v2285_v0  ;;  %2644 = vst [vmem:[#allocation24_spill] sm:$0xff] %v2288_v47  ;;  %v2290_v62 = vadd.f32 %v200_v56, %v74_v58  ;;  %v2293_v61 = vadd.f32 %v273_v57, %v2243_v55 }
  0xfb   :  { %v204_v2 = vpop.f32.mrf.mxu0  ;;  %v277_v3 = vpop.f32.mrf.mxu1 }
  0xfc   :  { %2645 = vst [vmem:[#allocation25_spill] sm:$0xff] %v2290_v62  ;;  %2646 = vst [vmem:[#allocation26_spill] sm:$0xff] %v2293_v61  ;;  %v2295_v25 = vadd.f32 %v204_v2, %v70_v54  ;;  %v2298_v14 = vadd.f32 %v277_v3, %v2237_v50 }
  0xfd   :  { %v206_v42 = vpop.f32.mrf.mxu0  ;;  %v279_v43 = vpop.f32.mrf.mxu1 }
  0xfe   :  { %2647 = vst [vmem:[#allocation27_spill] sm:$0xff] %v2295_v25  ;;  %2648 = vst [vmem:[#allocation28_spill] sm:$0xff] %v2298_v14  ;;  %v2300_v0 = vadd.f32 %v206_v42, %v74_v58  ;;  %v2303_v46 = vadd.f32 %v279_v43, %v2243_v55  ;;  %v175_v25 = vadd.f32 %v2233_v48, %v70_v54 }
  0xff   :  { %v208_v47 = vpop.f32.mrf.mxu0  ;;  %v281_v56 = vpop.f32.mrf.mxu1  ;;  %v177_v43 = vadd.f32 %v2239_v52, %v74_v58  ;;  %v250_v52 = vadd.f32 %v2241_v53, %v2243_v55 }
 0x100   :  { %2649 = vst [vmem:[#allocation29_spill] sm:$0xff] %v2300_v0  ;;  %2650 = vst [vmem:[#allocation30_spill] sm:$0xff] %v2303_v46  ;;  %v2305_v62 = vadd.f32 %v208_v47, %v70_v54  ;;  %v2308_v57 = vadd.f32 %v281_v56, %v2237_v50  ;;  %v248_v54 = vadd.f32 %v2235_v49, %v2237_v50 }
 0x101   :  { %v210_v61 = vpop.f32.mrf.mxu0  ;;  %v283_v2 = vpop.f32.mrf.mxu1 }
 0x102   :  { %2651 = vst [vmem:[#allocation31_spill] sm:$0xff] %v2305_v62  ;;  %2652 = vst [vmem:[#allocation32_spill] sm:$0xff] %v2308_v57  ;;  %v2311_v3 = vadd.f32 %v210_v61, %v74_v58  ;;  %v2314_v14 = vadd.f32 %v283_v2, %v2243_v55 }
 0x103   :  { %v560_v42 = vpop.f32.mrf.mxu0 }
 0x104   :  { %v608_v46 = vadd.f32 %v560_v42, %v175_v25  ;;  %v601_v0 = vpop.f32.mrf.mxu1 }
 0x105   :  { %v562_v45 = vpop.f32.mrf.mxu0  ;;  %v610_v61 = vadd.f32 %v601_v0, %v248_v54 }
 0x106   :  { %v1632_v47 = vmul.f32 -1.442695, %v608_v46  ;;  %v609_v62 = vadd.f32 %v562_v45, %v177_v43  ;;  %v603_v51 = vpop.f32.mrf.mxu1 }
 0x107   :  { %v564_v56 = vpop.f32.mrf.mxu0  ;;  %v1634_v58 = vmul.f32 -1.442695, %v610_v61  ;;  %v611_v2 = vadd.f32 %v603_v51, %v250_v52 }
 0x108   :  { %1778 = vpow2.f32 %v1632_v47  ;;  %v1633_v57 = vmul.f32 -1.442695, %v609_v62  ;;  %v605_v44 = vpop.f32.mrf.mxu1  ;;  %v2653_v56 = vmov 0  }
 0x109   :  { %v565_v41 = vpop.f32.mrf.mxu0 }
 0x10a   :  { %1780 = vpow2.f32 %v1633_v57  ;;  %v606_v48 = vpop.f32.mrf.mxu1 }
 0x10b   :  { %1782 = vpow2.f32 %v1634_v58 }
 0x115   :  { %v1779_v25 = vpop.eup %1778 }
 0x116   :  { %v621_v46 = vadd.f32 1.0, %v1779_v25 }
 0x117   :  { %v1781_v45 = vpop.eup %1780 }
 0x118   :  { %1784 = vrcp.f32 %v621_v46  ;;  %v622_v42 = vadd.f32 1.0, %v1781_v45  ;;  %v1783_v41 = vpop.eup %1782 }
 0x119   :  { %1786 = vtanh.f32 %v611_v2  ;;  %v623_v43 = vadd.f32 1.0, %v1783_v41 }
 0x11a   :  { %1788 = vrcp.f32 %v622_v42 }
 0x11b   :  { %1790 = vrcp.f32 %v623_v43 }
 0x125   :  { %v1785_v44 = vpop.eup %1784 }
 0x126   :  { %v1787_v62 = vpop.eup %1786 }
 0x127   :  { %v1789_v57 = vpop.eup %1788  ;;  %v632_v0 = vmul.f32 %v1787_v62, %v1785_v44 }
 0x128   :  { %v631_v49 = vmul.f32 0.0, %v1789_v57  ;;  %v1791_v53 = vpop.eup %1790 }
 0x12a   :  { %v2321_v50 = vadd.f32 %v632_v0, %v631_v49 }
 0x12c   :  { %1792 = vtanh.f32 %v2321_v50 }
 0x139   :  { %v1793_v55 = vpop.eup %1792 }
 0x13a   :  { %v635_v51 = vmul.f32 %v1793_v55, %v1791_v53 }
 0x13c   :  { %v643_v47 = vpack.c.bf16 %v635_v51, %v635_v51 }
 0x13e   :  { %677 = vmatmul.mubr.bf16.vlgmr.msra.gmra.mxu0 %v643_v47  ;;  %718 = vmatmul.mubr.bf16.vlgmr.msra.gmra.mxu1 %v643_v47 }
 0x13f   :  { %763 = vmatpush1.bf16.msra.mxu0 %v2077_v8  ;;  %804 = vmatpush1.bf16.msra.mxu1 %v2080_v9 }
 0x140   :  { %764 = vmatprep.subr.bf16.mxu0 %v2084_v10  ;;  %805 = vmatprep.subr.bf16.mxu1 %v2088_v11 }
 0x141   :  { %794 = vmatprep.mubr.bf16.mxu0 %v2653_v56  ;;  %835 = vmatprep.mubr.bf16.mxu1 %v2653_v56 }
 0x143   :  { %765 = vmatpush1.bf16.msra.mxu0 %v2090_v12  ;;  %806 = vmatpush1.bf16.msra.mxu1 %v2092_v13 }
 0x144   :  { %766 = vmatprep.subr.bf16.mxu0 %v2101_v15  ;;  %807 = vmatprep.subr.bf16.mxu1 %v2104_v16 }
 0x147   :  { %767 = vmatpush1.bf16.msra.mxu0 %v2107_v17  ;;  %808 = vmatpush1.bf16.msra.mxu1 %v2109_v18 }
 0x148   :  { %768 = vmatprep.subr.bf16.mxu0 %v2113_v19  ;;  %809 = vmatprep.subr.bf16.mxu1 %v2116_v20 }
 0x14b   :  { %769 = vmatpush1.bf16.msra.mxu0 %v2120_v21  ;;  %810 = vmatpush1.bf16.msra.mxu1 %v2123_v22 }
 0x14c   :  { %770 = vmatprep.subr.bf16.mxu0 %v2128_v23  ;;  %811 = vmatprep.subr.bf16.mxu1 %v2132_v24 }
 0x14f   :  { %771 = vmatpush1.bf16.msra.mxu0 %v2138_v26  ;;  %812 = vmatpush1.bf16.msra.mxu1 %v2142_v27 }
 0x150   :  { %772 = vmatprep.subr.bf16.mxu0 %v2144_v28  ;;  %813 = vmatprep.subr.bf16.mxu1 %v2147_v29 }
 0x153   :  { %773 = vmatpush1.bf16.msra.mxu0 %v2152_v30  ;;  %814 = vmatpush1.bf16.msra.mxu1 %v2154_v31 }
 0x154   :  { %774 = vmatprep.subr.bf16.mxu0 %v2159_v32  ;;  %815 = vmatprep.subr.bf16.mxu1 %v2163_v33 }
 0x157   :  { %775 = vmatpush1.bf16.msra.mxu0 %v2169_v35  ;;  %816 = vmatpush1.bf16.msra.mxu1 %v2173_v36 }
 0x158   :  { %776 = vmatprep.subr.bf16.mxu0 %v2175_v37  ;;  %817 = vmatprep.subr.bf16.mxu1 %v2178_v38 }
 0x15b   :  { %777 = vmatpush1.bf16.msra.mxu0 %v2183_v39  ;;  %818 = vmatpush1.bf16.msra.mxu1 %v2188_v40 }
 0x15c   :  { %880 = vmatprep.subr.bf16.mxu0 %v2073_v6  ;;  %921 = vmatprep.subr.bf16.mxu1 %v2075_v7 }
 0x1fe   :  { %v678_v48 = vpop.f32.mrf.mxu0  ;;  %v719_v54 = vpop.f32.mrf.mxu1 }
 0x1ff   :  { %v726_v61 = vadd.f32 %v678_v48, %v2245_v59  ;;  %v728_v62 = vadd.f32 %v719_v54, %v2248_v60 }
 0x200   :  { %v680_v52 = vpop.f32.mrf.mxu0  ;;  %v721_v58 = vpop.f32.mrf.mxu1 }
 0x201   :  { %v1635_v25 = vmul.f32 -1.442695, %v726_v61  ;;  %v727_v2 = vadd.f32 %v680_v52, %v2250_v63  ;;  %v1637_v57 = vmul.f32 -1.442695, %v728_v62  ;;  %v729_v43 = vadd.f32 %v721_v58, %v2253_v1 }
 0x202   :  { %v682_v46 = vpop.f32.mrf.mxu0  ;;  %v723_v45 = vpop.f32.mrf.mxu1 }
 0x203   :  { %1794 = vpow2.f32 %v1635_v25  ;;  %v1636_v42 = vmul.f32 -1.442695, %v727_v2 }
 0x204   :  { %v683_v41 = vpop.f32.mrf.mxu0  ;;  %v724_v44 = vpop.f32.mrf.mxu1 }
 0x205   :  { %1796 = vpow2.f32 %v1636_v42 }
 0x206   :  { %1798 = vpow2.f32 %v1637_v57 }
 0x207   :  { %1800 = vtanh.f32 %v729_v43 }
 0x210   :  { %v1795_v49 = vpop.eup %1794 }
 0x211   :  { %v739_v0 = vadd.f32 1.0, %v1795_v49 }
 0x212   :  { %v1797_v59 = vpop.eup %1796 }
 0x213   :  { %1802 = vrcp.f32 %v739_v0  ;;  %v740_v53 = vadd.f32 1.0, %v1797_v59  ;;  %v1799_v63 = vpop.eup %1798 }
 0x214   :  { %v1801_v55 = vpop.eup %1800  ;;  %v741_v61 = vadd.f32 1.0, %v1799_v63  ;;  %v2654_v63 = vld [vmem:[#allocation14_spill] sm:$0xff] }
 0x215   :  { %1804 = vrcp.f32 %v740_v53 }
 0x216   :  { %1806 = vrcp.f32 %v741_v61 }
 0x220   :  { %v1803_v51 = vpop.eup %1802 }
 0x221   :  { %v750_v47 = vmul.f32 %v1803_v51, %v1801_v55 }
 0x222   :  { %v1805_v48 = vpop.eup %1804 }
 0x223   :  { %v749_v52 = vmul.f32 %v1805_v48, %v2321_v50  ;;  %v1807_v1 = vpop.eup %1806 }
 0x225   :  { %v2363_v60 = vadd.f32 %v750_v47, %v749_v52 }
 0x227   :  { %1808 = vtanh.f32 %v2363_v60 }
 0x234   :  { %v1809_v54 = vpop.eup %1808 }
 0x235   :  { %v753_v58 = vmul.f32 %v1809_v54, %v1807_v1 }
 0x237   :  { %v761_v25 = vpack.c.bf16 %v753_v58, %v753_v58 }
 0x239   :  { %795 = vmatmul.mubr.bf16.vlgmr.msra.gmra.mxu0 %v761_v25  ;;  %836 = vmatmul.mubr.bf16.vlgmr.msra.gmra.mxu1 %v761_v25 }
 0x23a   :  { %881 = vmatpush1.bf16.msra.mxu0 %v2077_v8  ;;  %922 = vmatpush1.bf16.msra.mxu1 %v2080_v9 }
 0x23b   :  { %882 = vmatprep.subr.bf16.mxu0 %v2084_v10  ;;  %923 = vmatprep.subr.bf16.mxu1 %v2088_v11 }
 0x23c   :  { %912 = vmatprep.mubr.bf16.mxu0 %v2653_v56  ;;  %953 = vmatprep.mubr.bf16.mxu1 %v2653_v56 }
 0x23e   :  { %883 = vmatpush1.bf16.msra.mxu0 %v2090_v12  ;;  %924 = vmatpush1.bf16.msra.mxu1 %v2092_v13 }
 0x23f   :  { %884 = vmatprep.subr.bf16.mxu0 %v2101_v15  ;;  %925 = vmatprep.subr.bf16.mxu1 %v2104_v16 }
 0x242   :  { %885 = vmatpush1.bf16.msra.mxu0 %v2107_v17  ;;  %926 = vmatpush1.bf16.msra.mxu1 %v2109_v18 }
 0x243   :  { %886 = vmatprep.subr.bf16.mxu0 %v2113_v19  ;;  %927 = vmatprep.subr.bf16.mxu1 %v2116_v20 }
 0x246   :  { %887 = vmatpush1.bf16.msra.mxu0 %v2120_v21  ;;  %928 = vmatpush1.bf16.msra.mxu1 %v2123_v22 }
 0x247   :  { %888 = vmatprep.subr.bf16.mxu0 %v2128_v23  ;;  %929 = vmatprep.subr.bf16.mxu1 %v2132_v24 }
 0x24a   :  { %889 = vmatpush1.bf16.msra.mxu0 %v2138_v26  ;;  %930 = vmatpush1.bf16.msra.mxu1 %v2142_v27 }
 0x24b   :  { %890 = vmatprep.subr.bf16.mxu0 %v2144_v28  ;;  %931 = vmatprep.subr.bf16.mxu1 %v2147_v29 }
 0x24e   :  { %891 = vmatpush1.bf16.msra.mxu0 %v2152_v30  ;;  %932 = vmatpush1.bf16.msra.mxu1 %v2154_v31 }
 0x24f   :  { %892 = vmatprep.subr.bf16.mxu0 %v2159_v32  ;;  %933 = vmatprep.subr.bf16.mxu1 %v2163_v33 }
 0x252   :  { %893 = vmatpush1.bf16.msra.mxu0 %v2169_v35  ;;  %934 = vmatpush1.bf16.msra.mxu1 %v2173_v36 }
 0x253   :  { %894 = vmatprep.subr.bf16.mxu0 %v2175_v37  ;;  %935 = vmatprep.subr.bf16.mxu1 %v2178_v38 }
 0x256   :  { %895 = vmatpush1.bf16.msra.mxu0 %v2183_v39  ;;  %936 = vmatpush1.bf16.msra.mxu1 %v2188_v40 }
 0x257   :  { %998 = vmatprep.subr.bf16.mxu0 %v2073_v6  ;;  %1039 = vmatprep.subr.bf16.mxu1 %v2075_v7 }
 0x2f9   :  { %v796_v50 = vpop.f32.mrf.mxu0  ;;  %v837_v2 = vpop.f32.mrf.mxu1 }
 0x2fa   :  { %v844_v46 = vadd.f32 %v796_v50, %v2255_v4  ;;  %v846_v59 = vadd.f32 %v837_v2, %v2258_v5 }
 0x2fb   :  { %v798_v45 = vpop.f32.mrf.mxu0  ;;  %v839_v42 = vpop.f32.mrf.mxu1 }
 0x2fc   :  { %v1638_v41 = vmul.f32 -1.442695, %v844_v46  ;;  %v845_v44 = vadd.f32 %v798_v45, %v2260_v34  ;;  %v1640_v53 = vmul.f32 -1.442695, %v846_v59  ;;  %v847_v55 = vadd.f32 %v839_v42, %v2654_v63 }
 0x2fd   :  { %v800_v62 = vpop.f32.mrf.mxu0  ;;  %v841_v57 = vpop.f32.mrf.mxu1 }
 0x2fe   :  { %1810 = vpow2.f32 %v1638_v41  ;;  %v1639_v43 = vmul.f32 -1.442695, %v845_v44  ;;  %v2655_v41 = vld [vmem:[#allocation15_spill] sm:$0xff] }
 0x2ff   :  { %v801_v49 = vpop.f32.mrf.mxu0  ;;  %v842_v0 = vpop.f32.mrf.mxu1 }
 0x300   :  { %1812 = vpow2.f32 %v1639_v43  ;;  %v2656_v49 = vld [vmem:[#allocation17_spill] sm:$0xff] }
 0x301   :  { %1814 = vpow2.f32 %v1640_v53 }
 0x302   :  { %1816 = vtanh.f32 %v847_v55 }
 0x30b   :  { %v1811_v51 = vpop.eup %1810 }
 0x30c   :  { %v857_v47 = vadd.f32 1.0, %v1811_v51 }
 0x30d   :  { %v1813_v4 = vpop.eup %1812 }
 0x30e   :  { %1818 = vrcp.f32 %v857_v47  ;;  %v858_v48 = vadd.f32 1.0, %v1813_v4  ;;  %v1815_v34 = vpop.eup %1814  ;;  %v2657_v47 = vld [vmem:[#allocation16_spill] sm:$0xff] }
 0x30f   :  { %v1817_v61 = vpop.eup %1816  ;;  %v859_v58 = vadd.f32 1.0, %v1815_v34 }
 0x310   :  { %1820 = vrcp.f32 %v858_v48 }
 0x311   :  { %1822 = vrcp.f32 %v859_v58 }
 0x31b   :  { %v1819_v52 = vpop.eup %1818 }
 0x31c   :  { %v868_v1 = vmul.f32 %v1819_v52, %v1817_v61 }
 0x31d   :  { %v1821_v54 = vpop.eup %1820 }
 0x31e   :  { %v867_v25 = vmul.f32 %v1821_v54, %v2363_v60  ;;  %v1823_v50 = vpop.eup %1822 }
 0x320   :  { %v2405_v5 = vadd.f32 %v868_v1, %v867_v25 }
 0x322   :  { %1824 = vtanh.f32 %v2405_v5 }
 0x32f   :  { %v1825_v2 = vpop.eup %1824 }
 0x330   :  { %v871_v46 = vmul.f32 %v1825_v2, %v1823_v50 }
 0x332   :  { %v879_v45 = vpack.c.bf16 %v871_v46, %v871_v46 }
 0x334   :  { %913 = vmatmul.mubr.bf16.vlgmr.msra.gmra.mxu0 %v879_v45  ;;  %954 = vmatmul.mubr.bf16.vlgmr.msra.gmra.mxu1 %v879_v45 }
 0x335   :  { %999 = vmatpush1.bf16.msra.mxu0 %v2077_v8  ;;  %1040 = vmatpush1.bf16.msra.mxu1 %v2080_v9 }
 0x336   :  { %1000 = vmatprep.subr.bf16.mxu0 %v2084_v10  ;;  %1041 = vmatprep.subr.bf16.mxu1 %v2088_v11 }
 0x337   :  { %1030 = vmatprep.mubr.bf16.mxu0 %v2653_v56  ;;  %1071 = vmatprep.mubr.bf16.mxu1 %v2653_v56 }
 0x339   :  { %1001 = vmatpush1.bf16.msra.mxu0 %v2090_v12  ;;  %1042 = vmatpush1.bf16.msra.mxu1 %v2092_v13 }
 0x33a   :  { %1002 = vmatprep.subr.bf16.mxu0 %v2101_v15  ;;  %1043 = vmatprep.subr.bf16.mxu1 %v2104_v16 }
 0x33d   :  { %1003 = vmatpush1.bf16.msra.mxu0 %v2107_v17  ;;  %1044 = vmatpush1.bf16.msra.mxu1 %v2109_v18 }
 0x33e   :  { %1004 = vmatprep.subr.bf16.mxu0 %v2113_v19  ;;  %1045 = vmatprep.subr.bf16.mxu1 %v2116_v20 }
 0x341   :  { %1005 = vmatpush1.bf16.msra.mxu0 %v2120_v21  ;;  %1046 = vmatpush1.bf16.msra.mxu1 %v2123_v22 }
 0x342   :  { %1006 = vmatprep.subr.bf16.mxu0 %v2128_v23  ;;  %1047 = vmatprep.subr.bf16.mxu1 %v2132_v24 }
 0x345   :  { %1007 = vmatpush1.bf16.msra.mxu0 %v2138_v26  ;;  %1048 = vmatpush1.bf16.msra.mxu1 %v2142_v27 }
 0x346   :  { %1008 = vmatprep.subr.bf16.mxu0 %v2144_v28  ;;  %1049 = vmatprep.subr.bf16.mxu1 %v2147_v29 }
 0x349   :  { %1009 = vmatpush1.bf16.msra.mxu0 %v2152_v30  ;;  %1050 = vmatpush1.bf16.msra.mxu1 %v2154_v31 }
 0x34a   :  { %1010 = vmatprep.subr.bf16.mxu0 %v2159_v32  ;;  %1051 = vmatprep.subr.bf16.mxu1 %v2163_v33 }
 0x34d   :  { %1011 = vmatpush1.bf16.msra.mxu0 %v2169_v35  ;;  %1052 = vmatpush1.bf16.msra.mxu1 %v2173_v36 }
 0x34e   :  { %1012 = vmatprep.subr.bf16.mxu0 %v2175_v37  ;;  %1053 = vmatprep.subr.bf16.mxu1 %v2178_v38 }
 0x351   :  { %1013 = vmatpush1.bf16.msra.mxu0 %v2183_v39  ;;  %1054 = vmatpush1.bf16.msra.mxu1 %v2188_v40 }
 0x352   :  { %1116 = vmatprep.subr.bf16.mxu0 %v2073_v6  ;;  %1157 = vmatprep.subr.bf16.mxu1 %v2075_v7  ;;  %v2658_v7 = vld [vmem:[#allocation18_spill] sm:$0xff] }
 0x3f4   :  { %v914_v60 = vpop.f32.mrf.mxu0  ;;  %v955_v42 = vpop.f32.mrf.mxu1 }
 0x3f5   :  { %v962_v44 = vadd.f32 %v914_v60, %v2655_v41  ;;  %v964_v6 = vadd.f32 %v955_v42, %v2657_v47 }
 0x3f6   :  { %v916_v62 = vpop.f32.mrf.mxu0  ;;  %v957_v57 = vpop.f32.mrf.mxu1 }
 0x3f7   :  { %v1641_v43 = vmul.f32 -1.442695, %v962_v44  ;;  %v963_v0 = vadd.f32 %v916_v62, %v2656_v49  ;;  %v1643_v4 = vmul.f32 -1.442695, %v964_v6  ;;  %v965_v48 = vadd.f32 %v957_v57, %v2658_v7 }
 0x3f8   :  { %v918_v59 = vpop.f32.mrf.mxu0  ;;  %v959_v53 = vpop.f32.mrf.mxu1 }
 0x3f9   :  { %1826 = vpow2.f32 %v1641_v43  ;;  %v1642_v63 = vmul.f32 -1.442695, %v963_v0 }
 0x3fa   :  { %v919_v55 = vpop.f32.mrf.mxu0  ;;  %v960_v51 = vpop.f32.mrf.mxu1 }
 0x3fb   :  { %1828 = vpow2.f32 %v1642_v63 }
 0x3fc   :  { %1830 = vpow2.f32 %v1643_v4 }
 0x3fd   :  { %1832 = vtanh.f32 %v965_v48 }
 0x406   :  { %v1827_v34 = vpop.eup %1826 }
 0x407   :  { %v975_v61 = vadd.f32 1.0, %v1827_v34  ;;  %v2496_v34 = vld [vmem:[#allocation5 + $0xe0] ss:$16 sps:$4 sm:$0xff]  }
 0x408   :  { %v1829_v52 = vpop.eup %1828 }
 0x409   :  { %1834 = vrcp.f32 %v975_v61  ;;  %v976_v1 = vadd.f32 1.0, %v1829_v52  ;;  %v1831_v54 = vpop.eup %1830  ;;  %v2499_v61 = vld [vmem:[#allocation5 + $0xe8] ss:$16 sps:$4 sm:$0xff]   ;;  %v2502_v52 = vld [vmem:[#allocation5 + $0xc4] ss:$16 sps:$4 sm:$0xff]  }
 0x40a   :  { %v1833_v58 = vpop.eup %1832  ;;  %v977_v46 = vadd.f32 1.0, %v1831_v54  ;;  %v2510_v54 = vld [vmem:[#allocation5 + $0xc0] ss:$16 sps:$4 sm:$0xff]  }
 0x40b   :  { %1836 = vrcp.f32 %v976_v1  ;;  %v2505_v1 = vld [vmem:[#allocation5 + $0xcc] ss:$16 sps:$4 sm:$0xff]  }
 0x40c   :  { %1838 = vrcp.f32 %v977_v46  ;;  %v2525_v46 = vld [vmem:[#allocation5 + $0xa8] ss:$16 sps:$4 sm:$0xff]  }
 0x416   :  { %v1835_v25 = vpop.eup %1834 }
 0x417   :  { %v986_v50 = vmul.f32 %v1835_v25, %v1833_v58  ;;  %v2513_v58 = vld [vmem:[#allocation5 + $0xc8] ss:$16 sps:$4 sm:$0xff]   ;;  %v2516_v25 = vld [vmem:[#allocation5 + $0xa4] ss:$16 sps:$4 sm:$0xff]  }
 0x418   :  { %v1837_v2 = vpop.eup %1836 }
 0x419   :  { %v985_v45 = vmul.f32 %v1837_v2, %v2405_v5  ;;  %v1839_v42 = vpop.eup %1838  ;;  %v2522_v2 = vld [vmem:[#allocation5 + $0xa0] ss:$16 sps:$4 sm:$0xff]  }
 0x41b   :  { %v2447_v60 = vadd.f32 %v986_v50, %v985_v45  ;;  %v2519_v50 = vld [vmem:[#allocation5 + $0xac] ss:$16 sps:$4 sm:$0xff]   ;;  %v2528_v45 = vld [vmem:[#allocation5 + $0x84] ss:$16 sps:$4 sm:$0xff]  }
 0x41d   :  { %1840 = vtanh.f32 %v2447_v60 }
 0x42a   :  { %v1841_v41 = vpop.eup %1840 }
 0x42b   :  { %v989_v44 = vmul.f32 %v1841_v41, %v1839_v42  ;;  %v2534_v42 = vld [vmem:[#allocation5 + $0x80] ss:$16 sps:$4 sm:$0xff]   ;;  %v2537_v41 = vld [vmem:[#allocation5 + $0x88] ss:$16 sps:$4 sm:$0xff]  }
 0x42d   :  { %v997_v62 = vpack.c.bf16 %v989_v44, %v989_v44  ;;  %v2540_v44 = vld [vmem:[#allocation5 + $0x64] ss:$16 sps:$4 sm:$0xff]  }
 0x42f   :  { %1031 = vmatmul.mubr.bf16.vlgmr.msra.gmra.mxu0 %v997_v62  ;;  %1072 = vmatmul.mubr.bf16.vlgmr.msra.gmra.mxu1 %v997_v62  ;;  %v2543_v62 = vld [vmem:[#allocation5 + $0x6c] ss:$16 sps:$4 sm:$0xff]  }
 0x430   :  { %1117 = vmatpush1.bf16.msra.mxu0 %v2077_v8  ;;  %1158 = vmatpush1.bf16.msra.mxu1 %v2080_v9  ;;  %v2482_v8 = vld [vmem:[#allocation5 + $0xe4] ss:$16 sps:$4 sm:$0xff]   ;;  %v2485_v9 = vld [vmem:[#allocation5 + $0xec] ss:$16 sps:$4 sm:$0xff]  }
 0x431   :  { %1118 = vmatprep.subr.bf16.mxu0 %v2084_v10  ;;  %1159 = vmatprep.subr.bf16.mxu1 %v2088_v11 }
 0x432   :  { %1148 = vmatprep.mubr.bf16.mxu0 %v2653_v56  ;;  %1189 = vmatprep.mubr.bf16.mxu1 %v2653_v56 }
 0x434   :  { %1119 = vmatpush1.bf16.msra.mxu0 %v2090_v12  ;;  %1160 = vmatpush1.bf16.msra.mxu1 %v2092_v13  ;;  %v2659_v12 = vld [vmem:[#allocation19_spill] sm:$0xff] }
 0x435   :  { %1120 = vmatprep.subr.bf16.mxu0 %v2101_v15  ;;  %1161 = vmatprep.subr.bf16.mxu1 %v2104_v16 }
 0x438   :  { %1121 = vmatpush1.bf16.msra.mxu0 %v2107_v17  ;;  %1162 = vmatpush1.bf16.msra.mxu1 %v2109_v18  ;;  %v2660_v18 = vld [vmem:[#allocation21_spill] sm:$0xff] }
 0x439   :  { %1122 = vmatprep.subr.bf16.mxu0 %v2113_v19  ;;  %1163 = vmatprep.subr.bf16.mxu1 %v2116_v20 }
 0x43c   :  { %1123 = vmatpush1.bf16.msra.mxu0 %v2120_v21  ;;  %1164 = vmatpush1.bf16.msra.mxu1 %v2123_v22 }
 0x43d   :  { %1124 = vmatprep.subr.bf16.mxu0 %v2128_v23  ;;  %1165 = vmatprep.subr.bf16.mxu1 %v2132_v24 }
 0x440   :  { %1125 = vmatpush1.bf16.msra.mxu0 %v2138_v26  ;;  %1166 = vmatpush1.bf16.msra.mxu1 %v2142_v27  ;;  %v2661_v26 = vld [vmem:[#allocation20_spill] sm:$0xff] }
 0x441   :  { %1126 = vmatprep.subr.bf16.mxu0 %v2144_v28  ;;  %1167 = vmatprep.subr.bf16.mxu1 %v2147_v29  ;;  %v2662_v29 = vld [vmem:[#allocation22_spill] sm:$0xff] }
 0x444   :  { %1127 = vmatpush1.bf16.msra.mxu0 %v2152_v30  ;;  %1168 = vmatpush1.bf16.msra.mxu1 %v2154_v31 }
 0x445   :  { %1128 = vmatprep.subr.bf16.mxu0 %v2159_v32  ;;  %1169 = vmatprep.subr.bf16.mxu1 %v2163_v33 }
 0x448   :  { %1129 = vmatpush1.bf16.msra.mxu0 %v2169_v35  ;;  %1170 = vmatpush1.bf16.msra.mxu1 %v2173_v36 }
 0x449   :  { %1130 = vmatprep.subr.bf16.mxu0 %v2175_v37  ;;  %1171 = vmatprep.subr.bf16.mxu1 %v2178_v38 }
 0x44c   :  { %1131 = vmatpush1.bf16.msra.mxu0 %v2183_v39  ;;  %1172 = vmatpush1.bf16.msra.mxu1 %v2188_v40 }
 0x44d   :  { %1234 = vmatprep.subr.bf16.mxu0 %v2482_v8  ;;  %1275 = vmatprep.subr.bf16.mxu1 %v2485_v9 }
 0x4ef   :  { %v1032_v10 = vpop.f32.mrf.mxu0  ;;  %v1073_v11 = vpop.f32.mrf.mxu1 }
 0x4f0   :  { %v1080_v13 = vadd.f32 %v1032_v10, %v2659_v12  ;;  %v1082_v27 = vadd.f32 %v1073_v11, %v2661_v26  ;;  %v2546_v10 = vld [vmem:[#allocation5 + $0x60] ss:$16 sps:$4 sm:$0xff]   ;;  %v2549_v11 = vld [vmem:[#allocation5 + $0x68] ss:$16 sps:$4 sm:$0xff]   ;;  %v2552_v12 = vld [vmem:[#allocation5 + $0x44] ss:$16 sps:$4 sm:$0xff]  }
 0x4f1   :  { %v1034_v15 = vpop.f32.mrf.mxu0  ;;  %v1075_v16 = vpop.f32.mrf.mxu1 }
 0x4f2   :  { %v1644_v17 = vmul.f32 -1.442695, %v1080_v13  ;;  %v1081_v19 = vadd.f32 %v1034_v15, %v2660_v18  ;;  %v1646_v28 = vmul.f32 -1.442695, %v1082_v27  ;;  %v1083_v30 = vadd.f32 %v1075_v16, %v2662_v29  ;;  %v2555_v13 = vld [vmem:[#allocation5 + $0x4c] ss:$16 sps:$4 sm:$0xff]  }
 0x4f3   :  { %v1036_v20 = vpop.f32.mrf.mxu0  ;;  %v1077_v21 = vpop.f32.mrf.mxu1  ;;  %v2558_v15 = vld [vmem:[#allocation5 + $0x40] ss:$16 sps:$4 sm:$0xff]   ;;  %v2561_v16 = vld [vmem:[#allocation5 + $0x48] ss:$16 sps:$4 sm:$0xff]  }
 0x4f4   :  { %1842 = vpow2.f32 %v1644_v17  ;;  %v1645_v22 = vmul.f32 -1.442695, %v1081_v19  ;;  %v2663_v18 = vld [vmem:[#allocation23_spill] sm:$0xff] }
 0x4f5   :  { %v1037_v23 = vpop.f32.mrf.mxu0  ;;  %v1078_v24 = vpop.f32.mrf.mxu1 }
 0x4f6   :  { %1844 = vpow2.f32 %v1645_v22 }
 0x4f7   :  { %1846 = vpow2.f32 %v1646_v28 }
 0x4f8   :  { %1848 = vtanh.f32 %v1083_v30 }
 0x501   :  { %v1843_v31 = vpop.eup %1842 }
 0x502   :  { %v1093_v5 = vadd.f32 1.0, %v1843_v31 }
 0x503   :  { %v1845_v57 = vpop.eup %1844 }
 0x504   :  { %1850 = vrcp.f32 %v1093_v5  ;;  %v1094_v43 = vadd.f32 1.0, %v1845_v57  ;;  %v1847_v49 = vpop.eup %1846 }
 0x505   :  { %v1849_v0 = vpop.eup %1848  ;;  %v1095_v55 = vadd.f32 1.0, %v1847_v49 }
 0x506   :  { %1852 = vrcp.f32 %v1094_v43 }
 0x507   :  { %1854 = vrcp.f32 %v1095_v55 }
 0x511   :  { %v1851_v59 = vpop.eup %1850 }
 0x512   :  { %v1104_v53 = vmul.f32 %v1851_v59, %v1849_v0 }
 0x513   :  { %v1853_v63 = vpop.eup %1852 }
 0x514   :  { %v1103_v51 = vmul.f32 %v1853_v63, %v2447_v60  ;;  %v1855_v6 = vpop.eup %1854  ;;  %v2531_v60 = vld [vmem:[#allocation5 + $0x8c] ss:$16 sps:$4 sm:$0xff]  }
 0x516   :  { %v2493_v47 = vadd.f32 %v1104_v53, %v1103_v51 }
 0x518   :  { %1856 = vtanh.f32 %v2493_v47 }
 0x525   :  { %v1857_v4 = vpop.eup %1856 }
 0x526   :  { %v1107_v7 = vmul.f32 %v1857_v4, %v1855_v6  ;;  %v1932_v4 = vld [vmem:[#allocation5 + $0x20] ss:$16 sps:$4 sm:$0xff]  }
 0x528   :  { %v1115_v48 = vpack.c.bf16 %v1107_v7, %v1107_v7  ;;  %v1933_v7 = vld [vmem:[#allocation5 + $0x28] ss:$16 sps:$4 sm:$0xff]  }
 0x52a   :  { %1149 = vmatmul.mubr.bf16.vlgmr.msra.gmra.mxu0 %v1115_v48  ;;  %1190 = vmatmul.mubr.bf16.vlgmr.msra.gmra.mxu1 %v1115_v48  ;;  %v1934_v48 = vld [vmem:[#allocation5 + $0x4] ss:$16 sps:$4 sm:$0xff]  }
 0x52b   :  { %1235 = vmatpush1.bf16.msra.mxu0 %v2496_v34  ;;  %1276 = vmatpush1.bf16.msra.mxu1 %v2499_v61 }
 0x52c   :  { %1236 = vmatprep.subr.bf16.mxu0 %v2502_v52  ;;  %1277 = vmatprep.subr.bf16.mxu1 %v2505_v1 }
 0x52d   :  { %1266 = vmatprep.mubr.bf16.mxu0 %v2653_v56  ;;  %1307 = vmatprep.mubr.bf16.mxu1 %v2653_v56 }
 0x52f   :  { %1237 = vmatpush1.bf16.msra.mxu0 %v2510_v54  ;;  %1278 = vmatpush1.bf16.msra.mxu1 %v2513_v58 }
 0x530   :  { %1238 = vmatprep.subr.bf16.mxu0 %v2516_v25  ;;  %1279 = vmatprep.subr.bf16.mxu1 %v2519_v50 }
 0x533   :  { %1239 = vmatpush1.bf16.msra.mxu0 %v2522_v2  ;;  %1280 = vmatpush1.bf16.msra.mxu1 %v2525_v46 }
 0x534   :  { %1240 = vmatprep.subr.bf16.mxu0 %v2528_v45  ;;  %1281 = vmatprep.subr.bf16.mxu1 %v2531_v60 }
 0x537   :  { %1241 = vmatpush1.bf16.msra.mxu0 %v2534_v42  ;;  %1282 = vmatpush1.bf16.msra.mxu1 %v2537_v41 }
 0x538   :  { %1242 = vmatprep.subr.bf16.mxu0 %v2540_v44  ;;  %1283 = vmatprep.subr.bf16.mxu1 %v2543_v62 }
 0x53b   :  { %1243 = vmatpush1.bf16.msra.mxu0 %v2546_v10  ;;  %1284 = vmatpush1.bf16.msra.mxu1 %v2549_v11 }
 0x53c   :  { %1244 = vmatprep.subr.bf16.mxu0 %v2552_v12  ;;  %1285 = vmatprep.subr.bf16.mxu1 %v2555_v13 }
 0x53f   :  { %1245 = vmatpush1.bf16.msra.mxu0 %v2558_v15  ;;  %1286 = vmatpush1.bf16.msra.mxu1 %v2561_v16 }
 0x540   :  { %1246 = vmatprep.subr.bf16.mxu0 %v2159_v32  ;;  %1287 = vmatprep.subr.bf16.mxu1 %v2163_v33 }
 0x543   :  { %1247 = vmatpush1.bf16.msra.mxu0 %v2169_v35  ;;  %1288 = vmatpush1.bf16.msra.mxu1 %v2173_v36  ;;  %v2664_v36 = vld [vmem:[#allocation25_spill] sm:$0xff] }
 0x544   :  { %1248 = vmatprep.subr.bf16.mxu0 %v2175_v37  ;;  %1289 = vmatprep.subr.bf16.mxu1 %v2178_v38 }
 0x547   :  { %1249 = vmatpush1.bf16.msra.mxu0 %v2183_v39  ;;  %1290 = vmatpush1.bf16.msra.mxu1 %v2188_v40  ;;  %v2665_v40 = vld [vmem:[#allocation24_spill] sm:$0xff] }
 0x548   :  { %1352 = vmatprep.subr.bf16.mxu0 %v2482_v8  ;;  %1393 = vmatprep.subr.bf16.mxu1 %v2485_v9  ;;  %v2666_v9 = vld [vmem:[#allocation26_spill] sm:$0xff] }
 0x5ea   :  { %v1150_v17 = vpop.f32.mrf.mxu0  ;;  %v1191_v32 = vpop.f32.mrf.mxu1 }
 0x5eb   :  { %v1198_v33 = vadd.f32 %v1150_v17, %v2663_v18  ;;  %v1200_v8 = vadd.f32 %v1191_v32, %v2665_v40 }
 0x5ec   :  { %v1152_v19 = vpop.f32.mrf.mxu0  ;;  %v1193_v35 = vpop.f32.mrf.mxu1 }
 0x5ed   :  { %v1647_v20 = vmul.f32 -1.442695, %v1198_v33  ;;  %v1199_v21 = vadd.f32 %v1152_v19, %v2664_v36  ;;  %v1649_v24 = vmul.f32 -1.442695, %v1200_v8  ;;  %v1201_v26 = vadd.f32 %v1193_v35, %v2666_v9  ;;  %v1482_v9 = vld [vmem:[#allocation8 + $0x78] sm:$0xff] }
 0x5ee   :  { %v1154_v37 = vpop.f32.mrf.mxu0  ;;  %v1195_v22 = vpop.f32.mrf.mxu1 }
 0x5ef   :  { %1858 = vpow2.f32 %v1647_v20  ;;  %v1648_v38 = vmul.f32 -1.442695, %v1199_v21 }
 0x5f0   :  { %v1155_v39 = vpop.f32.mrf.mxu0  ;;  %v1196_v23 = vpop.f32.mrf.mxu1 }
 0x5f1   :  { %1860 = vpow2.f32 %v1648_v38 }
 0x5f2   :  { %1862 = vpow2.f32 %v1649_v24  ;;  %v2012_v24 = vmov 0.0  }
 0x5f3   :  { %1864 = vtanh.f32 %v1201_v26  ;;  %v1481_v26 = vld [vmem:[#allocation8 + $0x70] sm:$0xff] }
 0x5fc   :  { %v1859_v27 = vpop.eup %1858 }
 0x5fd   :  { %v1211_v28 = vadd.f32 1.0, %v1859_v27  ;;  %v1480_v27 = vld [vmem:[#allocation8 + $0x68] sm:$0xff] }
 0x5fe   :  { %v1861_v29 = vpop.eup %1860 }
 0x5ff   :  { %1866 = vrcp.f32 %v1211_v28  ;;  %v1212_v30 = vadd.f32 1.0, %v1861_v29  ;;  %v1863_v31 = vpop.eup %1862  ;;  %v1479_v28 = vld [vmem:[#allocation8 + $0x60] sm:$0xff]  ;;  %v1478_v29 = vld [vmem:[#allocation8 + $0x58] sm:$0xff] }
 0x600   :  { %v1865_v5 = vpop.eup %1864  ;;  %v1213_v0 = vadd.f32 1.0, %v1863_v31  ;;  %v1476_v31 = vld [vmem:[#allocation8 + $0x48] sm:$0xff] }
 0x601   :  { %1868 = vrcp.f32 %v1212_v30  ;;  %v1477_v30 = vld [vmem:[#allocation8 + $0x50] sm:$0xff] }
 0x602   :  { %1870 = vrcp.f32 %v1213_v0  ;;  %v1471_v0 = vld [vmem:[#allocation8 + $0x20] sm:$0xff] }
 0x60c   :  { %v1867_v57 = vpop.eup %1866 }
 0x60d   :  { %v1222_v43 = vmul.f32 %v1867_v57, %v1865_v5  ;;  %v1475_v5 = vld [vmem:[#allocation8 + $0x40] sm:$0xff]  ;;  %v1474_v57 = vld [vmem:[#allocation8 + $0x38] sm:$0xff] }
 0x60e   :  { %v1869_v49 = vpop.eup %1868 }
 0x60f   :  { %v1221_v59 = vmul.f32 %v1869_v49, %v2493_v47  ;;  %v1871_v63 = vpop.eup %1870  ;;  %v1931_v47 = vld [vmem:[#allocation5 + $0x2c] ss:$16 sps:$4 sm:$0xff]  }
 0x610   :  { %v1472_v49 = vld [vmem:[#allocation8 + $0x28] sm:$0xff] }
 0x611   :  { %v2579_v53 = vadd.f32 %v1222_v43, %v1221_v59  ;;  %v1473_v43 = vld [vmem:[#allocation8 + $0x30] sm:$0xff]  ;;  %v1470_v59 = vld [vmem:[#allocation8 + $0x18] sm:$0xff] }
 0x613   :  { %1872 = vtanh.f32 %v2579_v53 }
 0x620   :  { %v1873_v55 = vpop.eup %1872 }
 0x621   :  { %v1225_v51 = vmul.f32 %v1873_v55, %v1871_v63  ;;  %v1468_v63 = vld [vmem:[#allocation8 + $0x8] sm:$0xff]  ;;  %v1467_v55 = vld [vmem:[#allocation8] sm:$0xff] }
 0x623   :  { %v1233_v6 = vpack.c.bf16 %v1225_v51, %v1225_v51 }
 0x625   :  { %1267 = vmatmul.mubr.bf16.vlgmr.msra.gmra.mxu0 %v1233_v6  ;;  %1308 = vmatmul.mubr.bf16.vlgmr.msra.gmra.mxu1 %v1233_v6 }
 0x626   :  { %1353 = vmatpush1.bf16.msra.mxu0 %v2496_v34  ;;  %1394 = vmatpush1.bf16.msra.mxu1 %v2499_v61  ;;  %v1935_v34 = vld [vmem:[#allocation5 + $0xc] ss:$16 sps:$4 sm:$0xff]   ;;  %v1936_v61 = vld [vmem:[#allocation5] ss:$16 sps:$4 sm:$0xff]  }
 0x627   :  { %1354 = vmatprep.subr.bf16.mxu0 %v2502_v52  ;;  %1395 = vmatprep.subr.bf16.mxu1 %v2505_v1  ;;  %v1937_v52 = vld [vmem:[#allocation5 + $0x8] ss:$16 sps:$4 sm:$0xff]  }
 0x628   :  { %1384 = vmatprep.mubr.bf16.mxu0 %v2653_v56  ;;  %1425 = vmatprep.mubr.bf16.mxu1 %v2653_v56  ;;  %v1930_v56 = vld [vmem:[#allocation5 + $0x24] ss:$16 sps:$4 sm:$0xff]  }
 0x62a   :  { %1355 = vmatpush1.bf16.msra.mxu0 %v2510_v54  ;;  %1396 = vmatpush1.bf16.msra.mxu1 %v2513_v58  ;;  %v2667_v58 = vld [vmem:[#allocation27_spill] sm:$0xff] }
 0x62b   :  { %1356 = vmatprep.subr.bf16.mxu0 %v2516_v25  ;;  %1397 = vmatprep.subr.bf16.mxu1 %v2519_v50 }
 0x62e   :  { %1357 = vmatpush1.bf16.msra.mxu0 %v2522_v2  ;;  %1398 = vmatpush1.bf16.msra.mxu1 %v2525_v46 }
 0x62f   :  { %1358 = vmatprep.subr.bf16.mxu0 %v2528_v45  ;;  %1399 = vmatprep.subr.bf16.mxu1 %v2531_v60  ;;  %v2668_v45 = vld [vmem:[#allocation29_spill] sm:$0xff] }
 0x632   :  { %1359 = vmatpush1.bf16.msra.mxu0 %v2534_v42  ;;  %1400 = vmatpush1.bf16.msra.mxu1 %v2537_v41 }
 0x633   :  { %1360 = vmatprep.subr.bf16.mxu0 %v2540_v44  ;;  %1401 = vmatprep.subr.bf16.mxu1 %v2543_v62 }
 0x636   :  { %1361 = vmatpush1.bf16.msra.mxu0 %v2546_v10  ;;  %1402 = vmatpush1.bf16.msra.mxu1 %v2549_v11  ;;  %v2669_v11 = vld [vmem:[#allocation28_spill] sm:$0xff] }
 0x637   :  { %1362 = vmatprep.subr.bf16.mxu0 %v2552_v12  ;;  %1403 = vmatprep.subr.bf16.mxu1 %v2555_v13 }
 0x63a   :  { %1363 = vmatpush1.bf16.msra.mxu0 %v2558_v15  ;;  %1404 = vmatpush1.bf16.msra.mxu1 %v2561_v16  ;;  %v2670_v15 = vld [vmem:[#allocation30_spill] sm:$0xff] }
 0x63b   :  { %1364 = vmatprep.subr.bf16.mxu0 %v1930_v56  ;;  %1405 = vmatprep.subr.bf16.mxu1 %v1931_v47  ;;  %v2671_v56 = vld [vmem:[#allocation31_spill] sm:$0xff] }
 0x63e   :  { %1365 = vmatpush1.bf16.msra.mxu0 %v1932_v4  ;;  %1406 = vmatpush1.bf16.msra.mxu1 %v1933_v7 }
 0x63f   :  { %1366 = vmatprep.subr.bf16.mxu0 %v1934_v48  ;;  %1407 = vmatprep.subr.bf16.mxu1 %v1935_v34 }
 0x642   :  { %1367 = vmatpush1.bf16.msra.mxu0 %v1936_v61  ;;  %1408 = vmatpush1.bf16.msra.mxu1 %v1937_v52 }
 0x643   :  { %1674 = vmatprep.subr.mxu0 %v2012_v24 }
 0x6e5   :  { %v1268_v1 = vpop.f32.mrf.mxu0  ;;  %v1309_v54 = vpop.f32.mrf.mxu1 }
 0x6e6   :  { %v1316_v25 = vadd.f32 %v1268_v1, %v2667_v58  ;;  %v1318_v12 = vadd.f32 %v1309_v54, %v2669_v11 }
 0x6e7   :  { %v1270_v50 = vpop.f32.mrf.mxu0  ;;  %v1311_v2 = vpop.f32.mrf.mxu1 }
 0x6e8   :  { %v1650_v46 = vmul.f32 -1.442695, %v1316_v25  ;;  %v1317_v60 = vadd.f32 %v1270_v50, %v2668_v45  ;;  %v1652_v13 = vmul.f32 -1.442695, %v1318_v12  ;;  %v1319_v16 = vadd.f32 %v1311_v2, %v2670_v15  ;;  %v2672_v25 = vld [vmem:[#allocation32_spill] sm:$0xff] }
 0x6e9   :  { %v1272_v42 = vpop.f32.mrf.mxu0  ;;  %v1313_v41 = vpop.f32.mrf.mxu1 }
 0x6ea   :  { %1874 = vpow2.f32 %v1650_v46  ;;  %v1651_v44 = vmul.f32 -1.442695, %v1317_v60 }
 0x6eb   :  { %v1273_v62 = vpop.f32.mrf.mxu0  ;;  %v1314_v10 = vpop.f32.mrf.mxu1 }
 0x6ec   :  { %1876 = vpow2.f32 %v1651_v44 }
 0x6ed   :  { %1878 = vpow2.f32 %v1652_v13 }
 0x6ee   :  { %1880 = vtanh.f32 %v1319_v16 }
 0x6f7   :  { %v1875_v17 = vpop.eup %1874 }
 0x6f8   :  { %v1329_v32 = vadd.f32 1.0, %v1875_v17 }
 0x6f9   :  { %v1877_v18 = vpop.eup %1876 }
 0x6fa   :  { %1882 = vrcp.f32 %v1329_v32  ;;  %v1330_v33 = vadd.f32 1.0, %v1877_v18  ;;  %v1879_v19 = vpop.eup %1878  ;;  %v1656_v32 = vld [vmem:[%s2630_s5] ss:$0 sm:$0xff] }
 0x6fb   :  { %v1881_v35 = vpop.eup %1880  ;;  %v1331_v37 = vadd.f32 1.0, %v1879_v19 }
 0x6fc   :  { %1884 = vrcp.f32 %v1330_v33 }
 0x6fd   :  { %1886 = vrcp.f32 %v1331_v37 }
 0x707   :  { %v1883_v20 = vpop.eup %1882 }
 0x708   :  { %v1340_v36 = vmul.f32 %v1883_v20, %v1881_v35 }
 0x709   :  { %v1885_v21 = vpop.eup %1884 }
 0x70a   :  { %v1339_v22 = vmul.f32 %v1885_v21, %v2579_v53  ;;  %v1887_v39 = vpop.eup %1886  ;;  %v1469_v53 = vld [vmem:[#allocation8 + $0x10] sm:$0xff] }
 0x70c   :  { %v2611_v38 = vadd.f32 %v1340_v36, %v1339_v22 }
 0x70e   :  { %1888 = vtanh.f32 %v2611_v38 }
 0x71b   :  { %v1889_v23 = vpop.eup %1888 }
 0x71c   :  { %v1343_v40 = vmul.f32 %v1889_v23, %v1887_v39 }
 0x71e   :  { %v1351_v8 = vpack.c.bf16 %v1343_v40, %v1343_v40 }
 0x720   :  { %1385 = vmatmul.mubr.bf16.vlgmr.msra.gmra.mxu0 %v1351_v8  ;;  %1426 = vmatmul.mubr.bf16.vlgmr.msra.gmra.mxu1 %v1351_v8 }
 0x721   :  { %1675 = vmatpush3.msra.mxu0 %v1482_v9  ;;  %1706 = vmatprep.mubr.msk.f32.mxu0 %vm2013_vm1, %v2012_v24 }
 0x722   :  { %1676 = vmatprep.subr.mxu0 %v2012_v24 }
 0x723   :  { %1677 = vmatpush3.msra.mxu0 %v1481_v26 }
 0x724   :  { %1678 = vmatprep.subr.mxu0 %v2012_v24 }
 0x725   :  { %1679 = vmatpush3.msra.mxu0 %v1480_v27 }
 0x726   :  { %1680 = vmatprep.subr.mxu0 %v2012_v24 }
 0x727   :  { %1681 = vmatpush3.msra.mxu0 %v1479_v28 }
 0x728   :  { %1682 = vmatprep.subr.mxu0 %v2012_v24 }
 0x729   :  { %1683 = vmatpush3.msra.mxu0 %v1478_v29 }
 0x72a   :  { %1684 = vmatprep.subr.mxu0 %v2012_v24 }
 0x72b   :  { %1685 = vmatpush3.msra.mxu0 %v1477_v30 }
 0x72c   :  { %1686 = vmatprep.subr.mxu0 %v2012_v24 }
 0x72d   :  { %1687 = vmatpush3.msra.mxu0 %v1476_v31 }
 0x72e   :  { %1688 = vmatprep.subr.mxu0 %v2012_v24 }
 0x72f   :  { %1689 = vmatpush3.msra.mxu0 %v1475_v5 }
 0x730   :  { %1690 = vmatprep.subr.mxu0 %v2012_v24 }
 0x731   :  { %1691 = vmatpush3.msra.mxu0 %v1474_v57 }
 0x732   :  { %1692 = vmatprep.subr.mxu0 %v2012_v24 }
 0x733   :  { %1693 = vmatpush3.msra.mxu0 %v1473_v43 }
 0x734   :  { %1694 = vmatprep.subr.mxu0 %v2012_v24 }
 0x735   :  { %1695 = vmatpush3.msra.mxu0 %v1472_v49 }
 0x736   :  { %1696 = vmatprep.subr.mxu0 %v2012_v24 }
 0x737   :  { %1697 = vmatpush3.msra.mxu0 %v1471_v0 }
 0x738   :  { %1698 = vmatprep.subr.mxu0 %v2012_v24 }
 0x739   :  { %1699 = vmatpush3.msra.mxu0 %v1470_v59 }
 0x73a   :  { %1700 = vmatprep.subr.mxu0 %v2012_v24 }
 0x73b   :  { %1701 = vmatpush3.msra.mxu0 %v1469_v53 }
 0x73c   :  { %1702 = vmatprep.subr.mxu0 %v2012_v24 }
 0x73d   :  { %1703 = vmatpush3.msra.mxu0 %v1468_v63 }
 0x73e   :  { %1704 = vmatprep.subr.mxu0 %v2012_v24 }
 0x73f   :  { %1705 = vmatpush3.msra.mxu0 %v1467_v55 }
 0x7e0   :  { %v1386_v51 = vpop.f32.mrf.mxu0  ;;  %v1427_v6 = vpop.f32.mrf.mxu1 }
 0x7e1   :  { %v1434_v47 = vadd.f32 %v1386_v51, %v2671_v56  ;;  %v1436_v50 = vadd.f32 %v1427_v6, %v2672_v25 }
 0x7e2   :  { %v1388_v4 = vpop.f32.mrf.mxu0  ;;  %v1429_v7 = vpop.f32.mrf.mxu1 }
 0x7e3   :  { %v1653_v48 = vmul.f32 -1.442695, %v1434_v47  ;;  %v1435_v34 = vadd.f32 %v1388_v4, %v2311_v3  ;;  %v1655_v2 = vmul.f32 -1.442695, %v1436_v50  ;;  %v1437_v46 = vadd.f32 %v1429_v7, %v2314_v14 }
 0x7e4   :  { %v1390_v61 = vpop.f32.mrf.mxu0  ;;  %v1431_v52 = vpop.f32.mrf.mxu1 }
 0x7e5   :  { %1890 = vpow2.f32 %v1653_v48  ;;  %v1654_v1 = vmul.f32 -1.442695, %v1435_v34 }
 0x7e6   :  { %v1391_v54 = vpop.f32.mrf.mxu0  ;;  %v1432_v58 = vpop.f32.mrf.mxu1 }
 0x7e7   :  { %1892 = vpow2.f32 %v1654_v1 }
 0x7e8   :  { %1894 = vpow2.f32 %v1655_v2 }
 0x7e9   :  { %1896 = vtanh.f32 %v1437_v46 }
 0x7f2   :  { %v1891_v45 = vpop.eup %1890 }
 0x7f3   :  { %v1447_v60 = vadd.f32 1.0, %v1891_v45 }
 0x7f4   :  { %v1893_v42 = vpop.eup %1892 }
 0x7f5   :  { %1898 = vrcp.f32 %v1447_v60  ;;  %v1448_v41 = vadd.f32 1.0, %v1893_v42  ;;  %v1895_v3 = vpop.eup %1894 }
 0x7f6   :  { %v1897_v44 = vpop.eup %1896  ;;  %v1449_v12 = vadd.f32 1.0, %v1895_v3 }
 0x7f7   :  { %1900 = vrcp.f32 %v1448_v41 }
 0x7f8   :  { %1902 = vrcp.f32 %v1449_v12 }
 0x802   :  { %v1899_v62 = vpop.eup %1898 }
 0x803   :  { %v1458_v10 = vmul.f32 %v1899_v62, %v1897_v44 }
 0x804   :  { %v1901_v11 = vpop.eup %1900 }
 0x805   :  { %v1457_v13 = vmul.f32 %v1901_v11, %v2611_v38  ;;  %v1903_v14 = vpop.eup %1902 }
 0x807   :  { %v1459_v15 = vadd.f32 %v1458_v10, %v1457_v13 }
 0x809   :  { %1904 = vtanh.f32 %v1459_v15 }
 0x816   :  { %v1905_v16 = vpop.eup %1904 }
 0x817   :  { %v1461_v17 = vmul.f32 %v1905_v16, %v1903_v14 }
 0x819   :  { %1707 = vmatmul.mubr.f32.vlgmr.msra.gmra.mxu0 %v1461_v17 }
 0x8d9   :  { %v1556_v18 = vpop.f32.mrf.mxu0 }
 0x8da   :  { %v1557_v33 = vadd.f32 %v1656_v32, %v1556_v18 }
 0x8db   :  { %v1708_v19 = vpop.f32.mrf.mxu0 }
 0x8dc   :  { %1560 = vst [vmem:[#allocation10] sm:$0xff] %v1557_v33 }
 0x8dd   :  { %1989 = shalt.err (!%p1986_p0)
}
 0x8de   :  { %1570 = dma.vmem_to_hbm [thread:$0]  %s1568_s27, 128, %s2631_s6, [#allocation7]  }
 0x8df   :  { %2002 = dma.done.wait [#allocation7], 128  }
 0x8e0   :  { %2003 = vsyncadd [#allocation7], 4294967168 }
 0x8e1   :  { %1574 = vsyncpa [#allocation6], 1 }
 0x8e2   :  { %1575 = vsyncpa [#allocation9], 1 }
 0x8e3   :  { %1576 = vsyncpa [#allocation7], 1 }

</bundles_post_ra>
